<compile_context>
chip_gen: v7x
topology: tpu7x:2x2x1
jax: 0.10.0
libtpu: 0.0.40
codegen_flags: <defaults>
</compile_context>

<pallas_src>
import jax
import jax.numpy as jnp
from jax.experimental import pallas as pl
from jax.experimental.pallas import tpu as pltpu

CIN, COUT, KH, KW = 3, 6, 3, 3
LANES = 128


def _conv2d_kernel(w_ref, b_ref, x_ref, o_ref):
    # w_ref: (COUT*CIN*KH*KW,)   f32 in SMEM (flattened OIHW weights)
    # b_ref: (COUT,)             f32 in SMEM
    # x_ref: (CIN, H, NBW)       f32 in VMEM (NB images packed along lanes)
    # o_ref: (COUT_PER, OH, NBW) f32 in VMEM (this step's output-channel group)
    cout_per, oh, nbw = o_ref.shape
    cg = pl.program_id(1)                 # output-channel group index
    co0 = cg * cout_per                   # first output channel of this group

    # Hoisted bias broadcasts: one f32 accumulator per output channel.
    accs = [jnp.full((oh, nbw), b_ref[co0 + co], dtype=jnp.float32)
            for co in range(cout_per)]

    # Direct conv: 9 lane-aligned row-block loads per input channel; kw shifts
    # on the XLU via pltpu.roll; each shifted window reused by all channels of
    # this group.  The roll wrap only reaches columns c >= W-kw >= OW of each
    # packed W-wide segment, which the wrapper slices off.
    for ci in range(CIN):
        for kh in range(KH):
            rows = x_ref[ci, kh:kh + oh, :]           # (oh, nbw), lane offset 0
            for kw in range(KW):
                if kw == 0:
                    shifted = rows
                else:
                    # shifted[:, j] == rows[:, j + kw] (mod nbw)
                    shifted = pltpu.roll(rows, shift=nbw - kw, axis=1)
                base = ci * (KH * KW) + kh * KW + kw
                for co in range(cout_per):
                    w_scalar = w_ref[(co0 + co) * (CIN * KH * KW) + base]
                    accs[co] = accs[co] + shifted * w_scalar

    for co in range(cout_per):
        o_ref[co] = accs[co].astype(o_ref.dtype)      # lane-dense store


def tudui_forward(x, weight, bias):
    """Conv2d(3, 6, kernel_size=3, stride=1, padding=0) on an NCHW input."""
    n, cin, h, w = x.shape
    assert cin == CIN and weight.shape == (COUT, CIN, KH, KW)
    oh, ow = h - KH + 1, w - KW + 1

    # ---- pack NB images along the lane axis (layout plumbing) --------------
    nb = max(1, LANES // w)               # images per lane-row (8 at W=16)
    ng = -(-n // nb)                      # number of packed groups
    n_pad = ng * nb
    if n_pad != n:
        x = jnp.pad(x, ((0, n_pad - n), (0, 0), (0, 0), (0, 0)))
    # (NG, NB, CIN, H, W) -> (NG, CIN, H, NB, W) -> (NG, CIN, H, NB*W)
    x_packed = (x.reshape(ng, nb, CIN, h, w)
                 .transpose(0, 2, 3, 1, 4)
                 .reshape(ng, CIN, h, nb * w))
    nbw = nb * w

    w_flat = weight.reshape(-1).astype(jnp.float32)
    b_f32 = bias.astype(jnp.float32)

    # Second parallel axis (output-channel halves) only when the group axis is
    # too short to feed both v7x TensorCores; otherwise keep it trivial so 1-TC
    # chips don't pay extra per-step overhead.
    cout_split = 2 if ng < 2 else 1
    cout_per = COUT // cout_split

    y_packed = pl.pallas_call(
        _conv2d_kernel,
        out_shape=jax.ShapeDtypeStruct((ng, COUT, oh, nbw), x.dtype),
        grid=(ng, cout_split),
        in_specs=[
            pl.BlockSpec(memory_space=pltpu.MemorySpace.SMEM),        # weights
            pl.BlockSpec(memory_space=pltpu.MemorySpace.SMEM),        # bias
            pl.BlockSpec((None, CIN, h, nbw), lambda g, cg: (g, 0, 0, 0)),
        ],
        out_specs=pl.BlockSpec((None, cout_per, oh, nbw),
                               lambda g, cg: (g, cg, 0, 0)),
        compiler_params=pltpu.CompilerParams(
            dimension_semantics=("parallel", "parallel"),
            vmem_limit_bytes=64 * 1024 * 1024),
    )(w_flat, b_f32, x_packed)

    # ---- unpack (true-sized output; drops the >= OW garbage columns) -------
    y = (y_packed.reshape(ng, COUT, oh, nb, w)
                 .transpose(0, 3, 1, 2, 4)
                 .reshape(n_pad, COUT, oh, w))
    return y[:n, :, :, :ow]


if __name__ == "__main__":
    key = jax.random.PRNGKey(0)
    kx, kw_key, kb = jax.random.split(key, 3)
    x = jax.random.normal(kx, (2, CIN, 16, 16), dtype=jnp.float32)
    weight = jax.random.normal(kw_key, (COUT, CIN, KH, KW), dtype=jnp.float32) * 0.1
    bias = jax.random.normal(kb, (COUT,), dtype=jnp.float32) * 0.1

    y = tudui_forward(x, weight, bias)
    y = jax.block_until_ready(y)

    # reference check against XLA's conv (same semantics as torch Conv2d)
    ref = jax.lax.conv_general_dilated(
        x, weight, window_strides=(1, 1), padding="VALID",
        dimension_numbers=("NCHW", "OIHW", "NCHW")) + bias[None, :, None, None]

    assert y.shape == (2, COUT, 14, 14), y.shape
    assert jnp.allclose(y, ref, atol=1e-4, rtol=1e-4)
    print("KERNEL_OK")
</pallas_src>

<mosaic_0001>
module attributes {stable_mosaic.version = 11 : i64} {
  func.func @_conv2d_kernel(%arg0: i32, %arg1: i32, %arg2: memref<162xf32, #tpu.memory_space<smem>>, %arg3: memref<6xf32, #tpu.memory_space<smem>>, %arg4: memref<1x3x16x128xf32, #tpu.memory_space<vmem>>, %arg5: memref<1x3x14x128xf32, #tpu.memory_space<vmem>>) attributes {dimension_semantics = [#tpu.dimension_semantics<parallel>, #tpu.dimension_semantics<parallel>], iteration_bounds = array<i64: 1, 2>, scalar_prefetch = 0 : i64, scratch_operands = 0 : i64, tpu.core_type = #tpu.core_type<tc>, window_params = [{transform_indices = @transform_0, window_bounds = array<i64: 162>}, {transform_indices = @transform_1, window_bounds = array<i64: 6>}, {transform_indices = @transform_2, window_bounds = array<i64: 1, 3, 16, 128>}, {transform_indices = @transform_3, window_bounds = array<i64: 1, 3, 14, 128>}]} {
    %c3_i32 = arith.constant 3 : i32
    %0 = arith.muli %arg1, %c3_i32 : i32
    %c0_i32 = arith.constant 0 : i32
    %1 = arith.addi %0, %c0_i32 : i32
    %2 = arith.index_cast %1 : i32 to index
    %3 = memref.load %arg3[%2] : memref<6xf32, #tpu.memory_space<smem>>
    %4 = vector.broadcast %3 : f32 to vector<14x128xf32>
    %c1_i32 = arith.constant 1 : i32
    %5 = arith.addi %0, %c1_i32 : i32
    %6 = arith.index_cast %5 : i32 to index
    %7 = memref.load %arg3[%6] : memref<6xf32, #tpu.memory_space<smem>>
    %8 = vector.broadcast %7 : f32 to vector<14x128xf32>
    %c2_i32 = arith.constant 2 : i32
    %9 = arith.addi %0, %c2_i32 : i32
    %10 = arith.index_cast %9 : i32 to index
    %11 = memref.load %arg3[%10] : memref<6xf32, #tpu.memory_space<smem>>
    %12 = vector.broadcast %11 : f32 to vector<14x128xf32>
    %c0 = arith.constant 0 : index
    %c0_0 = arith.constant 0 : index
    %c0_1 = arith.constant 0 : index
    %c0_2 = arith.constant 0 : index
    %13 = vector.load %arg4[%c0, %c0_0, %c0_1, %c0_2] : memref<1x3x16x128xf32, #tpu.memory_space<vmem>>, vector<1x1x14x128xf32>
    %14 = vector.shape_cast %13 : vector<1x1x14x128xf32> to vector<14x128xf32>
    %c0_i32_3 = arith.constant 0 : i32
    %15 = arith.addi %0, %c0_i32_3 : i32
    %c27_i32 = arith.constant 27 : i32
    %16 = arith.muli %15, %c27_i32 : i32
    %c0_i32_4 = arith.constant 0 : i32
    %17 = arith.addi %16, %c0_i32_4 : i32
    %18 = arith.index_cast %17 : i32 to index
    %19 = memref.load %arg2[%18] : memref<162xf32, #tpu.memory_space<smem>>
    %20 = vector.broadcast %19 : f32 to vector<14x128xf32>
    %21 = arith.mulf %14, %20 : vector<14x128xf32>
    %22 = arith.addf %4, %21 : vector<14x128xf32>
    %c1_i32_5 = arith.constant 1 : i32
    %23 = arith.addi %0, %c1_i32_5 : i32
    %c27_i32_6 = arith.constant 27 : i32
    %24 = arith.muli %23, %c27_i32_6 : i32
    %c0_i32_7 = arith.constant 0 : i32
    %25 = arith.addi %24, %c0_i32_7 : i32
    %26 = arith.index_cast %25 : i32 to index
    %27 = memref.load %arg2[%26] : memref<162xf32, #tpu.memory_space<smem>>
    %28 = vector.broadcast %27 : f32 to vector<14x128xf32>
    %29 = arith.mulf %14, %28 : vector<14x128xf32>
    %30 = arith.addf %8, %29 : vector<14x128xf32>
    %c2_i32_8 = arith.constant 2 : i32
    %31 = arith.addi %0, %c2_i32_8 : i32
    %c27_i32_9 = arith.constant 27 : i32
    %32 = arith.muli %31, %c27_i32_9 : i32
    %c0_i32_10 = arith.constant 0 : i32
    %33 = arith.addi %32, %c0_i32_10 : i32
    %34 = arith.index_cast %33 : i32 to index
    %35 = memref.load %arg2[%34] : memref<162xf32, #tpu.memory_space<smem>>
    %36 = vector.broadcast %35 : f32 to vector<14x128xf32>
    %37 = arith.mulf %14, %36 : vector<14x128xf32>
    %38 = arith.addf %12, %37 : vector<14x128xf32>
    %c127_i32 = arith.constant 127 : i32
    %39 = tpu.dynamic_rotate %14 by %c127_i32 dim 1 : vector<14x128xf32>, i32 -> vector<14x128xf32>
    %c0_i32_11 = arith.constant 0 : i32
    %40 = arith.addi %0, %c0_i32_11 : i32
    %c27_i32_12 = arith.constant 27 : i32
    %41 = arith.muli %40, %c27_i32_12 : i32
    %c1_i32_13 = arith.constant 1 : i32
    %42 = arith.addi %41, %c1_i32_13 : i32
    %43 = arith.index_cast %42 : i32 to index
    %44 = memref.load %arg2[%43] : memref<162xf32, #tpu.memory_space<smem>>
    %45 = vector.broadcast %44 : f32 to vector<14x128xf32>
    %46 = arith.mulf %39, %45 : vector<14x128xf32>
    %47 = arith.addf %22, %46 : vector<14x128xf32>
    %c1_i32_14 = arith.constant 1 : i32
    %48 = arith.addi %0, %c1_i32_14 : i32
    %c27_i32_15 = arith.constant 27 : i32
    %49 = arith.muli %48, %c27_i32_15 : i32
    %c1_i32_16 = arith.constant 1 : i32
    %50 = arith.addi %49, %c1_i32_16 : i32
    %51 = arith.index_cast %50 : i32 to index
    %52 = memref.load %arg2[%51] : memref<162xf32, #tpu.memory_space<smem>>
    %53 = vector.broadcast %52 : f32 to vector<14x128xf32>
    %54 = arith.mulf %39, %53 : vector<14x128xf32>
    %55 = arith.addf %30, %54 : vector<14x128xf32>
    %c2_i32_17 = arith.constant 2 : i32
    %56 = arith.addi %0, %c2_i32_17 : i32
    %c27_i32_18 = arith.constant 27 : i32
    %57 = arith.muli %56, %c27_i32_18 : i32
    %c1_i32_19 = arith.constant 1 : i32
    %58 = arith.addi %57, %c1_i32_19 : i32
    %59 = arith.index_cast %58 : i32 to index
    %60 = memref.load %arg2[%59] : memref<162xf32, #tpu.memory_space<smem>>
    %61 = vector.broadcast %60 : f32 to vector<14x128xf32>
    %62 = arith.mulf %39, %61 : vector<14x128xf32>
    %63 = arith.addf %38, %62 : vector<14x128xf32>
    %c126_i32 = arith.constant 126 : i32
    %64 = tpu.dynamic_rotate %14 by %c126_i32 dim 1 : vector<14x128xf32>, i32 -> vector<14x128xf32>
    %c0_i32_20 = arith.constant 0 : i32
    %65 = arith.addi %0, %c0_i32_20 : i32
    %c27_i32_21 = arith.constant 27 : i32
    %66 = arith.muli %65, %c27_i32_21 : i32
    %c2_i32_22 = arith.constant 2 : i32
    %67 = arith.addi %66, %c2_i32_22 : i32
    %68 = arith.index_cast %67 : i32 to index
    %69 = memref.load %arg2[%68] : memref<162xf32, #tpu.memory_space<smem>>
    %70 = vector.broadcast %69 : f32 to vector<14x128xf32>
    %71 = arith.mulf %64, %70 : vector<14x128xf32>
    %72 = arith.addf %47, %71 : vector<14x128xf32>
    %c1_i32_23 = arith.constant 1 : i32
    %73 = arith.addi %0, %c1_i32_23 : i32
    %c27_i32_24 = arith.constant 27 : i32
    %74 = arith.muli %73, %c27_i32_24 : i32
    %c2_i32_25 = arith.constant 2 : i32
    %75 = arith.addi %74, %c2_i32_25 : i32
    %76 = arith.index_cast %75 : i32 to index
    %77 = memref.load %arg2[%76] : memref<162xf32, #tpu.memory_space<smem>>
    %78 = vector.broadcast %77 : f32 to vector<14x128xf32>
    %79 = arith.mulf %64, %78 : vector<14x128xf32>
    %80 = arith.addf %55, %79 : vector<14x128xf32>
    %c2_i32_26 = arith.constant 2 : i32
    %81 = arith.addi %0, %c2_i32_26 : i32
    %c27_i32_27 = arith.constant 27 : i32
    %82 = arith.muli %81, %c27_i32_27 : i32
    %c2_i32_28 = arith.constant 2 : i32
    %83 = arith.addi %82, %c2_i32_28 : i32
    %84 = arith.index_cast %83 : i32 to index
    %85 = memref.load %arg2[%84] : memref<162xf32, #tpu.memory_space<smem>>
    %86 = vector.broadcast %85 : f32 to vector<14x128xf32>
    %87 = arith.mulf %64, %86 : vector<14x128xf32>
    %88 = arith.addf %63, %87 : vector<14x128xf32>
    %c0_29 = arith.constant 0 : index
    %c0_30 = arith.constant 0 : index
    %c1 = arith.constant 1 : index
    %c0_31 = arith.constant 0 : index
    %89 = vector.load %arg4[%c0_29, %c0_30, %c1, %c0_31] : memref<1x3x16x128xf32, #tpu.memory_space<vmem>>, vector<1x1x14x128xf32>
    %90 = vector.shape_cast %89 : vector<1x1x14x128xf32> to vector<14x128xf32>
    %c0_i32_32 = arith.constant 0 : i32
    %91 = arith.addi %0, %c0_i32_32 : i32
    %c27_i32_33 = arith.constant 27 : i32
    %92 = arith.muli %91, %c27_i32_33 : i32
    %c3_i32_34 = arith.constant 3 : i32
    %93 = arith.addi %92, %c3_i32_34 : i32
    %94 = arith.index_cast %93 : i32 to index
    %95 = memref.load %arg2[%94] : memref<162xf32, #tpu.memory_space<smem>>
    %96 = vector.broadcast %95 : f32 to vector<14x128xf32>
    %97 = arith.mulf %90, %96 : vector<14x128xf32>
    %98 = arith.addf %72, %97 : vector<14x128xf32>
    %c1_i32_35 = arith.constant 1 : i32
    %99 = arith.addi %0, %c1_i32_35 : i32
    %c27_i32_36 = arith.constant 27 : i32
    %100 = arith.muli %99, %c27_i32_36 : i32
    %c3_i32_37 = arith.constant 3 : i32
    %101 = arith.addi %100, %c3_i32_37 : i32
    %102 = arith.index_cast %101 : i32 to index
    %103 = memref.load %arg2[%102] : memref<162xf32, #tpu.memory_space<smem>>
    %104 = vector.broadcast %103 : f32 to vector<14x128xf32>
    %105 = arith.mulf %90, %104 : vector<14x128xf32>
    %106 = arith.addf %80, %105 : vector<14x128xf32>
    %c2_i32_38 = arith.constant 2 : i32
    %107 = arith.addi %0, %c2_i32_38 : i32
    %c27_i32_39 = arith.constant 27 : i32
    %108 = arith.muli %107, %c27_i32_39 : i32
    %c3_i32_40 = arith.constant 3 : i32
    %109 = arith.addi %108, %c3_i32_40 : i32
    %110 = arith.index_cast %109 : i32 to index
    %111 = memref.load %arg2[%110] : memref<162xf32, #tpu.memory_space<smem>>
    %112 = vector.broadcast %111 : f32 to vector<14x128xf32>
    %113 = arith.mulf %90, %112 : vector<14x128xf32>
    %114 = arith.addf %88, %113 : vector<14x128xf32>
    %c127_i32_41 = arith.constant 127 : i32
    %115 = tpu.dynamic_rotate %90 by %c127_i32_41 dim 1 : vector<14x128xf32>, i32 -> vector<14x128xf32>
    %c0_i32_42 = arith.constant 0 : i32
    %116 = arith.addi %0, %c0_i32_42 : i32
    %c27_i32_43 = arith.constant 27 : i32
    %117 = arith.muli %116, %c27_i32_43 : i32
    %c4_i32 = arith.constant 4 : i32
    %118 = arith.addi %117, %c4_i32 : i32
    %119 = arith.index_cast %118 : i32 to index
    %120 = memref.load %arg2[%119] : memref<162xf32, #tpu.memory_space<smem>>
    %121 = vector.broadcast %120 : f32 to vector<14x128xf32>
    %122 = arith.mulf %115, %121 : vector<14x128xf32>
    %123 = arith.addf %98, %122 : vector<14x128xf32>
    %c1_i32_44 = arith.constant 1 : i32
    %124 = arith.addi %0, %c1_i32_44 : i32
    %c27_i32_45 = arith.constant 27 : i32
    %125 = arith.muli %124, %c27_i32_45 : i32
    %c4_i32_46 = arith.constant 4 : i32
    %126 = arith.addi %125, %c4_i32_46 : i32
    %127 = arith.index_cast %126 : i32 to index
    %128 = memref.load %arg2[%127] : memref<162xf32, #tpu.memory_space<smem>>
    %129 = vector.broadcast %128 : f32 to vector<14x128xf32>
    %130 = arith.mulf %115, %129 : vector<14x128xf32>
    %131 = arith.addf %106, %130 : vector<14x128xf32>
    %c2_i32_47 = arith.constant 2 : i32
    %132 = arith.addi %0, %c2_i32_47 : i32
    %c27_i32_48 = arith.constant 27 : i32
    %133 = arith.muli %132, %c27_i32_48 : i32
    %c4_i32_49 = arith.constant 4 : i32
    %134 = arith.addi %133, %c4_i32_49 : i32
    %135 = arith.index_cast %134 : i32 to index
    %136 = memref.load %arg2[%135] : memref<162xf32, #tpu.memory_space<smem>>
    %137 = vector.broadcast %136 : f32 to vector<14x128xf32>
    %138 = arith.mulf %115, %137 : vector<14x128xf32>
    %139 = arith.addf %114, %138 : vector<14x128xf32>
    %c126_i32_50 = arith.constant 126 : i32
    %140 = tpu.dynamic_rotate %90 by %c126_i32_50 dim 1 : vector<14x128xf32>, i32 -> vector<14x128xf32>
    %c0_i32_51 = arith.constant 0 : i32
    %141 = arith.addi %0, %c0_i32_51 : i32
    %c27_i32_52 = arith.constant 27 : i32
    %142 = arith.muli %141, %c27_i32_52 : i32
    %c5_i32 = arith.constant 5 : i32
    %143 = arith.addi %142, %c5_i32 : i32
    %144 = arith.index_cast %143 : i32 to index
    %145 = memref.load %arg2[%144] : memref<162xf32, #tpu.memory_space<smem>>
    %146 = vector.broadcast %145 : f32 to vector<14x128xf32>
    %147 = arith.mulf %140, %146 : vector<14x128xf32>
    %148 = arith.addf %123, %147 : vector<14x128xf32>
    %c1_i32_53 = arith.constant 1 : i32
    %149 = arith.addi %0, %c1_i32_53 : i32
    %c27_i32_54 = arith.constant 27 : i32
    %150 = arith.muli %149, %c27_i32_54 : i32
    %c5_i32_55 = arith.constant 5 : i32
    %151 = arith.addi %150, %c5_i32_55 : i32
    %152 = arith.index_cast %151 : i32 to index
    %153 = memref.load %arg2[%152] : memref<162xf32, #tpu.memory_space<smem>>
    %154 = vector.broadcast %153 : f32 to vector<14x128xf32>
    %155 = arith.mulf %140, %154 : vector<14x128xf32>
    %156 = arith.addf %131, %155 : vector<14x128xf32>
    %c2_i32_56 = arith.constant 2 : i32
    %157 = arith.addi %0, %c2_i32_56 : i32
    %c27_i32_57 = arith.constant 27 : i32
    %158 = arith.muli %157, %c27_i32_57 : i32
    %c5_i32_58 = arith.constant 5 : i32
    %159 = arith.addi %158, %c5_i32_58 : i32
    %160 = arith.index_cast %159 : i32 to index
    %161 = memref.load %arg2[%160] : memref<162xf32, #tpu.memory_space<smem>>
    %162 = vector.broadcast %161 : f32 to vector<14x128xf32>
    %163 = arith.mulf %140, %162 : vector<14x128xf32>
    %164 = arith.addf %139, %163 : vector<14x128xf32>
    %c0_59 = arith.constant 0 : index
    %c0_60 = arith.constant 0 : index
    %c2 = arith.constant 2 : index
    %c0_61 = arith.constant 0 : index
    %165 = vector.load %arg4[%c0_59, %c0_60, %c2, %c0_61] : memref<1x3x16x128xf32, #tpu.memory_space<vmem>>, vector<1x1x14x128xf32>
    %166 = vector.shape_cast %165 : vector<1x1x14x128xf32> to vector<14x128xf32>
    %c0_i32_62 = arith.constant 0 : i32
    %167 = arith.addi %0, %c0_i32_62 : i32
    %c27_i32_63 = arith.constant 27 : i32
    %168 = arith.muli %167, %c27_i32_63 : i32
    %c6_i32 = arith.constant 6 : i32
    %169 = arith.addi %168, %c6_i32 : i32
    %170 = arith.index_cast %169 : i32 to index
    %171 = memref.load %arg2[%170] : memref<162xf32, #tpu.memory_space<smem>>
    %172 = vector.broadcast %171 : f32 to vector<14x128xf32>
    %173 = arith.mulf %166, %172 : vector<14x128xf32>
    %174 = arith.addf %148, %173 : vector<14x128xf32>
    %c1_i32_64 = arith.constant 1 : i32
    %175 = arith.addi %0, %c1_i32_64 : i32
    %c27_i32_65 = arith.constant 27 : i32
    %176 = arith.muli %175, %c27_i32_65 : i32
    %c6_i32_66 = arith.constant 6 : i32
    %177 = arith.addi %176, %c6_i32_66 : i32
    %178 = arith.index_cast %177 : i32 to index
    %179 = memref.load %arg2[%178] : memref<162xf32, #tpu.memory_space<smem>>
    %180 = vector.broadcast %179 : f32 to vector<14x128xf32>
    %181 = arith.mulf %166, %180 : vector<14x128xf32>
    %182 = arith.addf %156, %181 : vector<14x128xf32>
    %c2_i32_67 = arith.constant 2 : i32
    %183 = arith.addi %0, %c2_i32_67 : i32
    %c27_i32_68 = arith.constant 27 : i32
    %184 = arith.muli %183, %c27_i32_68 : i32
    %c6_i32_69 = arith.constant 6 : i32
    %185 = arith.addi %184, %c6_i32_69 : i32
    %186 = arith.index_cast %185 : i32 to index
    %187 = memref.load %arg2[%186] : memref<162xf32, #tpu.memory_space<smem>>
    %188 = vector.broadcast %187 : f32 to vector<14x128xf32>
    %189 = arith.mulf %166, %188 : vector<14x128xf32>
    %190 = arith.addf %164, %189 : vector<14x128xf32>
    %c127_i32_70 = arith.constant 127 : i32
    %191 = tpu.dynamic_rotate %166 by %c127_i32_70 dim 1 : vector<14x128xf32>, i32 -> vector<14x128xf32>
    %c0_i32_71 = arith.constant 0 : i32
    %192 = arith.addi %0, %c0_i32_71 : i32
    %c27_i32_72 = arith.constant 27 : i32
    %193 = arith.muli %192, %c27_i32_72 : i32
    %c7_i32 = arith.constant 7 : i32
    %194 = arith.addi %193, %c7_i32 : i32
    %195 = arith.index_cast %194 : i32 to index
    %196 = memref.load %arg2[%195] : memref<162xf32, #tpu.memory_space<smem>>
    %197 = vector.broadcast %196 : f32 to vector<14x128xf32>
    %198 = arith.mulf %191, %197 : vector<14x128xf32>
    %199 = arith.addf %174, %198 : vector<14x128xf32>
    %c1_i32_73 = arith.constant 1 : i32
    %200 = arith.addi %0, %c1_i32_73 : i32
    %c27_i32_74 = arith.constant 27 : i32
    %201 = arith.muli %200, %c27_i32_74 : i32
    %c7_i32_75 = arith.constant 7 : i32
    %202 = arith.addi %201, %c7_i32_75 : i32
    %203 = arith.index_cast %202 : i32 to index
    %204 = memref.load %arg2[%203] : memref<162xf32, #tpu.memory_space<smem>>
    %205 = vector.broadcast %204 : f32 to vector<14x128xf32>
    %206 = arith.mulf %191, %205 : vector<14x128xf32>
    %207 = arith.addf %182, %206 : vector<14x128xf32>
    %c2_i32_76 = arith.constant 2 : i32
    %208 = arith.addi %0, %c2_i32_76 : i32
    %c27_i32_77 = arith.constant 27 : i32
    %209 = arith.muli %208, %c27_i32_77 : i32
    %c7_i32_78 = arith.constant 7 : i32
    %210 = arith.addi %209, %c7_i32_78 : i32
    %211 = arith.index_cast %210 : i32 to index
    %212 = memref.load %arg2[%211] : memref<162xf32, #tpu.memory_space<smem>>
    %213 = vector.broadcast %212 : f32 to vector<14x128xf32>
    %214 = arith.mulf %191, %213 : vector<14x128xf32>
    %215 = arith.addf %190, %214 : vector<14x128xf32>
    %c126_i32_79 = arith.constant 126 : i32
    %216 = tpu.dynamic_rotate %166 by %c126_i32_79 dim 1 : vector<14x128xf32>, i32 -> vector<14x128xf32>
    %c0_i32_80 = arith.constant 0 : i32
    %217 = arith.addi %0, %c0_i32_80 : i32
    %c27_i32_81 = arith.constant 27 : i32
    %218 = arith.muli %217, %c27_i32_81 : i32
    %c8_i32 = arith.constant 8 : i32
    %219 = arith.addi %218, %c8_i32 : i32
    %220 = arith.index_cast %219 : i32 to index
    %221 = memref.load %arg2[%220] : memref<162xf32, #tpu.memory_space<smem>>
    %222 = vector.broadcast %221 : f32 to vector<14x128xf32>
    %223 = arith.mulf %216, %222 : vector<14x128xf32>
    %224 = arith.addf %199, %223 : vector<14x128xf32>
    %c1_i32_82 = arith.constant 1 : i32
    %225 = arith.addi %0, %c1_i32_82 : i32
    %c27_i32_83 = arith.constant 27 : i32
    %226 = arith.muli %225, %c27_i32_83 : i32
    %c8_i32_84 = arith.constant 8 : i32
    %227 = arith.addi %226, %c8_i32_84 : i32
    %228 = arith.index_cast %227 : i32 to index
    %229 = memref.load %arg2[%228] : memref<162xf32, #tpu.memory_space<smem>>
    %230 = vector.broadcast %229 : f32 to vector<14x128xf32>
    %231 = arith.mulf %216, %230 : vector<14x128xf32>
    %232 = arith.addf %207, %231 : vector<14x128xf32>
    %c2_i32_85 = arith.constant 2 : i32
    %233 = arith.addi %0, %c2_i32_85 : i32
    %c27_i32_86 = arith.constant 27 : i32
    %234 = arith.muli %233, %c27_i32_86 : i32
    %c8_i32_87 = arith.constant 8 : i32
    %235 = arith.addi %234, %c8_i32_87 : i32
    %236 = arith.index_cast %235 : i32 to index
    %237 = memref.load %arg2[%236] : memref<162xf32, #tpu.memory_space<smem>>
    %238 = vector.broadcast %237 : f32 to vector<14x128xf32>
    %239 = arith.mulf %216, %238 : vector<14x128xf32>
    %240 = arith.addf %215, %239 : vector<14x128xf32>
    %c0_88 = arith.constant 0 : index
    %c1_89 = arith.constant 1 : index
    %c0_90 = arith.constant 0 : index
    %c0_91 = arith.constant 0 : index
    %241 = vector.load %arg4[%c0_88, %c1_89, %c0_90, %c0_91] : memref<1x3x16x128xf32, #tpu.memory_space<vmem>>, vector<1x1x14x128xf32>
    %242 = vector.shape_cast %241 : vector<1x1x14x128xf32> to vector<14x128xf32>
    %c0_i32_92 = arith.constant 0 : i32
    %243 = arith.addi %0, %c0_i32_92 : i32
    %c27_i32_93 = arith.constant 27 : i32
    %244 = arith.muli %243, %c27_i32_93 : i32
    %c9_i32 = arith.constant 9 : i32
    %245 = arith.addi %244, %c9_i32 : i32
    %246 = arith.index_cast %245 : i32 to index
    %247 = memref.load %arg2[%246] : memref<162xf32, #tpu.memory_space<smem>>
    %248 = vector.broadcast %247 : f32 to vector<14x128xf32>
    %249 = arith.mulf %242, %248 : vector<14x128xf32>
    %250 = arith.addf %224, %249 : vector<14x128xf32>
    %c1_i32_94 = arith.constant 1 : i32
    %251 = arith.addi %0, %c1_i32_94 : i32
    %c27_i32_95 = arith.constant 27 : i32
    %252 = arith.muli %251, %c27_i32_95 : i32
    %c9_i32_96 = arith.constant 9 : i32
    %253 = arith.addi %252, %c9_i32_96 : i32
    %254 = arith.index_cast %253 : i32 to index
    %255 = memref.load %arg2[%254] : memref<162xf32, #tpu.memory_space<smem>>
    %256 = vector.broadcast %255 : f32 to vector<14x128xf32>
    %257 = arith.mulf %242, %256 : vector<14x128xf32>
    %258 = arith.addf %232, %257 : vector<14x128xf32>
    %c2_i32_97 = arith.constant 2 : i32
    %259 = arith.addi %0, %c2_i32_97 : i32
    %c27_i32_98 = arith.constant 27 : i32
    %260 = arith.muli %259, %c27_i32_98 : i32
    %c9_i32_99 = arith.constant 9 : i32
    %261 = arith.addi %260, %c9_i32_99 : i32
    %262 = arith.index_cast %261 : i32 to index
    %263 = memref.load %arg2[%262] : memref<162xf32, #tpu.memory_space<smem>>
    %264 = vector.broadcast %263 : f32 to vector<14x128xf32>
    %265 = arith.mulf %242, %264 : vector<14x128xf32>
    %266 = arith.addf %240, %265 : vector<14x128xf32>
    %c127_i32_100 = arith.constant 127 : i32
    %267 = tpu.dynamic_rotate %242 by %c127_i32_100 dim 1 : vector<14x128xf32>, i32 -> vector<14x128xf32>
    %c0_i32_101 = arith.constant 0 : i32
    %268 = arith.addi %0, %c0_i32_101 : i32
    %c27_i32_102 = arith.constant 27 : i32
    %269 = arith.muli %268, %c27_i32_102 : i32
    %c10_i32 = arith.constant 10 : i32
    %270 = arith.addi %269, %c10_i32 : i32
    %271 = arith.index_cast %270 : i32 to index
    %272 = memref.load %arg2[%271] : memref<162xf32, #tpu.memory_space<smem>>
    %273 = vector.broadcast %272 : f32 to vector<14x128xf32>
    %274 = arith.mulf %267, %273 : vector<14x128xf32>
    %275 = arith.addf %250, %274 : vector<14x128xf32>
    %c1_i32_103 = arith.constant 1 : i32
    %276 = arith.addi %0, %c1_i32_103 : i32
    %c27_i32_104 = arith.constant 27 : i32
    %277 = arith.muli %276, %c27_i32_104 : i32
    %c10_i32_105 = arith.constant 10 : i32
    %278 = arith.addi %277, %c10_i32_105 : i32
    %279 = arith.index_cast %278 : i32 to index
    %280 = memref.load %arg2[%279] : memref<162xf32, #tpu.memory_space<smem>>
    %281 = vector.broadcast %280 : f32 to vector<14x128xf32>
    %282 = arith.mulf %267, %281 : vector<14x128xf32>
    %283 = arith.addf %258, %282 : vector<14x128xf32>
    %c2_i32_106 = arith.constant 2 : i32
    %284 = arith.addi %0, %c2_i32_106 : i32
    %c27_i32_107 = arith.constant 27 : i32
    %285 = arith.muli %284, %c27_i32_107 : i32
    %c10_i32_108 = arith.constant 10 : i32
    %286 = arith.addi %285, %c10_i32_108 : i32
    %287 = arith.index_cast %286 : i32 to index
    %288 = memref.load %arg2[%287] : memref<162xf32, #tpu.memory_space<smem>>
    %289 = vector.broadcast %288 : f32 to vector<14x128xf32>
    %290 = arith.mulf %267, %289 : vector<14x128xf32>
    %291 = arith.addf %266, %290 : vector<14x128xf32>
    %c126_i32_109 = arith.constant 126 : i32
    %292 = tpu.dynamic_rotate %242 by %c126_i32_109 dim 1 : vector<14x128xf32>, i32 -> vector<14x128xf32>
    %c0_i32_110 = arith.constant 0 : i32
    %293 = arith.addi %0, %c0_i32_110 : i32
    %c27_i32_111 = arith.constant 27 : i32
    %294 = arith.muli %293, %c27_i32_111 : i32
    %c11_i32 = arith.constant 11 : i32
    %295 = arith.addi %294, %c11_i32 : i32
    %296 = arith.index_cast %295 : i32 to index
    %297 = memref.load %arg2[%296] : memref<162xf32, #tpu.memory_space<smem>>
    %298 = vector.broadcast %297 : f32 to vector<14x128xf32>
    %299 = arith.mulf %292, %298 : vector<14x128xf32>
    %300 = arith.addf %275, %299 : vector<14x128xf32>
    %c1_i32_112 = arith.constant 1 : i32
    %301 = arith.addi %0, %c1_i32_112 : i32
    %c27_i32_113 = arith.constant 27 : i32
    %302 = arith.muli %301, %c27_i32_113 : i32
    %c11_i32_114 = arith.constant 11 : i32
    %303 = arith.addi %302, %c11_i32_114 : i32
    %304 = arith.index_cast %303 : i32 to index
    %305 = memref.load %arg2[%304] : memref<162xf32, #tpu.memory_space<smem>>
    %306 = vector.broadcast %305 : f32 to vector<14x128xf32>
    %307 = arith.mulf %292, %306 : vector<14x128xf32>
    %308 = arith.addf %283, %307 : vector<14x128xf32>
    %c2_i32_115 = arith.constant 2 : i32
    %309 = arith.addi %0, %c2_i32_115 : i32
    %c27_i32_116 = arith.constant 27 : i32
    %310 = arith.muli %309, %c27_i32_116 : i32
    %c11_i32_117 = arith.constant 11 : i32
    %311 = arith.addi %310, %c11_i32_117 : i32
    %312 = arith.index_cast %311 : i32 to index
    %313 = memref.load %arg2[%312] : memref<162xf32, #tpu.memory_space<smem>>
    %314 = vector.broadcast %313 : f32 to vector<14x128xf32>
    %315 = arith.mulf %292, %314 : vector<14x128xf32>
    %316 = arith.addf %291, %315 : vector<14x128xf32>
    %c0_118 = arith.constant 0 : index
    %c1_119 = arith.constant 1 : index
    %c1_120 = arith.constant 1 : index
    %c0_121 = arith.constant 0 : index
    %317 = vector.load %arg4[%c0_118, %c1_119, %c1_120, %c0_121] : memref<1x3x16x128xf32, #tpu.memory_space<vmem>>, vector<1x1x14x128xf32>
    %318 = vector.shape_cast %317 : vector<1x1x14x128xf32> to vector<14x128xf32>
    %c0_i32_122 = arith.constant 0 : i32
    %319 = arith.addi %0, %c0_i32_122 : i32
    %c27_i32_123 = arith.constant 27 : i32
    %320 = arith.muli %319, %c27_i32_123 : i32
    %c12_i32 = arith.constant 12 : i32
    %321 = arith.addi %320, %c12_i32 : i32
    %322 = arith.index_cast %321 : i32 to index
    %323 = memref.load %arg2[%322] : memref<162xf32, #tpu.memory_space<smem>>
    %324 = vector.broadcast %323 : f32 to vector<14x128xf32>
    %325 = arith.mulf %318, %324 : vector<14x128xf32>
    %326 = arith.addf %300, %325 : vector<14x128xf32>
    %c1_i32_124 = arith.constant 1 : i32
    %327 = arith.addi %0, %c1_i32_124 : i32
    %c27_i32_125 = arith.constant 27 : i32
    %328 = arith.muli %327, %c27_i32_125 : i32
    %c12_i32_126 = arith.constant 12 : i32
    %329 = arith.addi %328, %c12_i32_126 : i32
    %330 = arith.index_cast %329 : i32 to index
    %331 = memref.load %arg2[%330] : memref<162xf32, #tpu.memory_space<smem>>
    %332 = vector.broadcast %331 : f32 to vector<14x128xf32>
    %333 = arith.mulf %318, %332 : vector<14x128xf32>
    %334 = arith.addf %308, %333 : vector<14x128xf32>
    %c2_i32_127 = arith.constant 2 : i32
    %335 = arith.addi %0, %c2_i32_127 : i32
    %c27_i32_128 = arith.constant 27 : i32
    %336 = arith.muli %335, %c27_i32_128 : i32
    %c12_i32_129 = arith.constant 12 : i32
    %337 = arith.addi %336, %c12_i32_129 : i32
    %338 = arith.index_cast %337 : i32 to index
    %339 = memref.load %arg2[%338] : memref<162xf32, #tpu.memory_space<smem>>
    %340 = vector.broadcast %339 : f32 to vector<14x128xf32>
    %341 = arith.mulf %318, %340 : vector<14x128xf32>
    %342 = arith.addf %316, %341 : vector<14x128xf32>
    %c127_i32_130 = arith.constant 127 : i32
    %343 = tpu.dynamic_rotate %318 by %c127_i32_130 dim 1 : vector<14x128xf32>, i32 -> vector<14x128xf32>
    %c0_i32_131 = arith.constant 0 : i32
    %344 = arith.addi %0, %c0_i32_131 : i32
    %c27_i32_132 = arith.constant 27 : i32
    %345 = arith.muli %344, %c27_i32_132 : i32
    %c13_i32 = arith.constant 13 : i32
    %346 = arith.addi %345, %c13_i32 : i32
    %347 = arith.index_cast %346 : i32 to index
    %348 = memref.load %arg2[%347] : memref<162xf32, #tpu.memory_space<smem>>
    %349 = vector.broadcast %348 : f32 to vector<14x128xf32>
    %350 = arith.mulf %343, %349 : vector<14x128xf32>
    %351 = arith.addf %326, %350 : vector<14x128xf32>
    %c1_i32_133 = arith.constant 1 : i32
    %352 = arith.addi %0, %c1_i32_133 : i32
    %c27_i32_134 = arith.constant 27 : i32
    %353 = arith.muli %352, %c27_i32_134 : i32
    %c13_i32_135 = arith.constant 13 : i32
    %354 = arith.addi %353, %c13_i32_135 : i32
    %355 = arith.index_cast %354 : i32 to index
    %356 = memref.load %arg2[%355] : memref<162xf32, #tpu.memory_space<smem>>
    %357 = vector.broadcast %356 : f32 to vector<14x128xf32>
    %358 = arith.mulf %343, %357 : vector<14x128xf32>
    %359 = arith.addf %334, %358 : vector<14x128xf32>
    %c2_i32_136 = arith.constant 2 : i32
    %360 = arith.addi %0, %c2_i32_136 : i32
    %c27_i32_137 = arith.constant 27 : i32
    %361 = arith.muli %360, %c27_i32_137 : i32
    %c13_i32_138 = arith.constant 13 : i32
    %362 = arith.addi %361, %c13_i32_138 : i32
    %363 = arith.index_cast %362 : i32 to index
    %364 = memref.load %arg2[%363] : memref<162xf32, #tpu.memory_space<smem>>
    %365 = vector.broadcast %364 : f32 to vector<14x128xf32>
    %366 = arith.mulf %343, %365 : vector<14x128xf32>
    %367 = arith.addf %342, %366 : vector<14x128xf32>
    %c126_i32_139 = arith.constant 126 : i32
    %368 = tpu.dynamic_rotate %318 by %c126_i32_139 dim 1 : vector<14x128xf32>, i32 -> vector<14x128xf32>
    %c0_i32_140 = arith.constant 0 : i32
    %369 = arith.addi %0, %c0_i32_140 : i32
    %c27_i32_141 = arith.constant 27 : i32
    %370 = arith.muli %369, %c27_i32_141 : i32
    %c14_i32 = arith.constant 14 : i32
    %371 = arith.addi %370, %c14_i32 : i32
    %372 = arith.index_cast %371 : i32 to index
    %373 = memref.load %arg2[%372] : memref<162xf32, #tpu.memory_space<smem>>
    %374 = vector.broadcast %373 : f32 to vector<14x128xf32>
    %375 = arith.mulf %368, %374 : vector<14x128xf32>
    %376 = arith.addf %351, %375 : vector<14x128xf32>
    %c1_i32_142 = arith.constant 1 : i32
    %377 = arith.addi %0, %c1_i32_142 : i32
    %c27_i32_143 = arith.constant 27 : i32
    %378 = arith.muli %377, %c27_i32_143 : i32
    %c14_i32_144 = arith.constant 14 : i32
    %379 = arith.addi %378, %c14_i32_144 : i32
    %380 = arith.index_cast %379 : i32 to index
    %381 = memref.load %arg2[%380] : memref<162xf32, #tpu.memory_space<smem>>
    %382 = vector.broadcast %381 : f32 to vector<14x128xf32>
    %383 = arith.mulf %368, %382 : vector<14x128xf32>
    %384 = arith.addf %359, %383 : vector<14x128xf32>
    %c2_i32_145 = arith.constant 2 : i32
    %385 = arith.addi %0, %c2_i32_145 : i32
    %c27_i32_146 = arith.constant 27 : i32
    %386 = arith.muli %385, %c27_i32_146 : i32
    %c14_i32_147 = arith.constant 14 : i32
    %387 = arith.addi %386, %c14_i32_147 : i32
    %388 = arith.index_cast %387 : i32 to index
    %389 = memref.load %arg2[%388] : memref<162xf32, #tpu.memory_space<smem>>
    %390 = vector.broadcast %389 : f32 to vector<14x128xf32>
    %391 = arith.mulf %368, %390 : vector<14x128xf32>
    %392 = arith.addf %367, %391 : vector<14x128xf32>
    %c0_148 = arith.constant 0 : index
    %c1_149 = arith.constant 1 : index
    %c2_150 = arith.constant 2 : index
    %c0_151 = arith.constant 0 : index
    %393 = vector.load %arg4[%c0_148, %c1_149, %c2_150, %c0_151] : memref<1x3x16x128xf32, #tpu.memory_space<vmem>>, vector<1x1x14x128xf32>
    %394 = vector.shape_cast %393 : vector<1x1x14x128xf32> to vector<14x128xf32>
    %c0_i32_152 = arith.constant 0 : i32
    %395 = arith.addi %0, %c0_i32_152 : i32
    %c27_i32_153 = arith.constant 27 : i32
    %396 = arith.muli %395, %c27_i32_153 : i32
    %c15_i32 = arith.constant 15 : i32
    %397 = arith.addi %396, %c15_i32 : i32
    %398 = arith.index_cast %397 : i32 to index
    %399 = memref.load %arg2[%398] : memref<162xf32, #tpu.memory_space<smem>>
    %400 = vector.broadcast %399 : f32 to vector<14x128xf32>
    %401 = arith.mulf %394, %400 : vector<14x128xf32>
    %402 = arith.addf %376, %401 : vector<14x128xf32>
    %c1_i32_154 = arith.constant 1 : i32
    %403 = arith.addi %0, %c1_i32_154 : i32
    %c27_i32_155 = arith.constant 27 : i32
    %404 = arith.muli %403, %c27_i32_155 : i32
    %c15_i32_156 = arith.constant 15 : i32
    %405 = arith.addi %404, %c15_i32_156 : i32
    %406 = arith.index_cast %405 : i32 to index
    %407 = memref.load %arg2[%406] : memref<162xf32, #tpu.memory_space<smem>>
    %408 = vector.broadcast %407 : f32 to vector<14x128xf32>
    %409 = arith.mulf %394, %408 : vector<14x128xf32>
    %410 = arith.addf %384, %409 : vector<14x128xf32>
    %c2_i32_157 = arith.constant 2 : i32
    %411 = arith.addi %0, %c2_i32_157 : i32
    %c27_i32_158 = arith.constant 27 : i32
    %412 = arith.muli %411, %c27_i32_158 : i32
    %c15_i32_159 = arith.constant 15 : i32
    %413 = arith.addi %412, %c15_i32_159 : i32
    %414 = arith.index_cast %413 : i32 to index
    %415 = memref.load %arg2[%414] : memref<162xf32, #tpu.memory_space<smem>>
    %416 = vector.broadcast %415 : f32 to vector<14x128xf32>
    %417 = arith.mulf %394, %416 : vector<14x128xf32>
    %418 = arith.addf %392, %417 : vector<14x128xf32>
    %c127_i32_160 = arith.constant 127 : i32
    %419 = tpu.dynamic_rotate %394 by %c127_i32_160 dim 1 : vector<14x128xf32>, i32 -> vector<14x128xf32>
    %c0_i32_161 = arith.constant 0 : i32
    %420 = arith.addi %0, %c0_i32_161 : i32
    %c27_i32_162 = arith.constant 27 : i32
    %421 = arith.muli %420, %c27_i32_162 : i32
    %c16_i32 = arith.constant 16 : i32
    %422 = arith.addi %421, %c16_i32 : i32
    %423 = arith.index_cast %422 : i32 to index
    %424 = memref.load %arg2[%423] : memref<162xf32, #tpu.memory_space<smem>>
    %425 = vector.broadcast %424 : f32 to vector<14x128xf32>
    %426 = arith.mulf %419, %425 : vector<14x128xf32>
    %427 = arith.addf %402, %426 : vector<14x128xf32>
    %c1_i32_163 = arith.constant 1 : i32
    %428 = arith.addi %0, %c1_i32_163 : i32
    %c27_i32_164 = arith.constant 27 : i32
    %429 = arith.muli %428, %c27_i32_164 : i32
    %c16_i32_165 = arith.constant 16 : i32
    %430 = arith.addi %429, %c16_i32_165 : i32
    %431 = arith.index_cast %430 : i32 to index
    %432 = memref.load %arg2[%431] : memref<162xf32, #tpu.memory_space<smem>>
    %433 = vector.broadcast %432 : f32 to vector<14x128xf32>
    %434 = arith.mulf %419, %433 : vector<14x128xf32>
    %435 = arith.addf %410, %434 : vector<14x128xf32>
    %c2_i32_166 = arith.constant 2 : i32
    %436 = arith.addi %0, %c2_i32_166 : i32
    %c27_i32_167 = arith.constant 27 : i32
    %437 = arith.muli %436, %c27_i32_167 : i32
    %c16_i32_168 = arith.constant 16 : i32
    %438 = arith.addi %437, %c16_i32_168 : i32
    %439 = arith.index_cast %438 : i32 to index
    %440 = memref.load %arg2[%439] : memref<162xf32, #tpu.memory_space<smem>>
    %441 = vector.broadcast %440 : f32 to vector<14x128xf32>
    %442 = arith.mulf %419, %441 : vector<14x128xf32>
    %443 = arith.addf %418, %442 : vector<14x128xf32>
    %c126_i32_169 = arith.constant 126 : i32
    %444 = tpu.dynamic_rotate %394 by %c126_i32_169 dim 1 : vector<14x128xf32>, i32 -> vector<14x128xf32>
    %c0_i32_170 = arith.constant 0 : i32
    %445 = arith.addi %0, %c0_i32_170 : i32
    %c27_i32_171 = arith.constant 27 : i32
    %446 = arith.muli %445, %c27_i32_171 : i32
    %c17_i32 = arith.constant 17 : i32
    %447 = arith.addi %446, %c17_i32 : i32
    %448 = arith.index_cast %447 : i32 to index
    %449 = memref.load %arg2[%448] : memref<162xf32, #tpu.memory_space<smem>>
    %450 = vector.broadcast %449 : f32 to vector<14x128xf32>
    %451 = arith.mulf %444, %450 : vector<14x128xf32>
    %452 = arith.addf %427, %451 : vector<14x128xf32>
    %c1_i32_172 = arith.constant 1 : i32
    %453 = arith.addi %0, %c1_i32_172 : i32
    %c27_i32_173 = arith.constant 27 : i32
    %454 = arith.muli %453, %c27_i32_173 : i32
    %c17_i32_174 = arith.constant 17 : i32
    %455 = arith.addi %454, %c17_i32_174 : i32
    %456 = arith.index_cast %455 : i32 to index
    %457 = memref.load %arg2[%456] : memref<162xf32, #tpu.memory_space<smem>>
    %458 = vector.broadcast %457 : f32 to vector<14x128xf32>
    %459 = arith.mulf %444, %458 : vector<14x128xf32>
    %460 = arith.addf %435, %459 : vector<14x128xf32>
    %c2_i32_175 = arith.constant 2 : i32
    %461 = arith.addi %0, %c2_i32_175 : i32
    %c27_i32_176 = arith.constant 27 : i32
    %462 = arith.muli %461, %c27_i32_176 : i32
    %c17_i32_177 = arith.constant 17 : i32
    %463 = arith.addi %462, %c17_i32_177 : i32
    %464 = arith.index_cast %463 : i32 to index
    %465 = memref.load %arg2[%464] : memref<162xf32, #tpu.memory_space<smem>>
    %466 = vector.broadcast %465 : f32 to vector<14x128xf32>
    %467 = arith.mulf %444, %466 : vector<14x128xf32>
    %468 = arith.addf %443, %467 : vector<14x128xf32>
    %c0_178 = arith.constant 0 : index
    %c2_179 = arith.constant 2 : index
    %c0_180 = arith.constant 0 : index
    %c0_181 = arith.constant 0 : index
    %469 = vector.load %arg4[%c0_178, %c2_179, %c0_180, %c0_181] : memref<1x3x16x128xf32, #tpu.memory_space<vmem>>, vector<1x1x14x128xf32>
    %470 = vector.shape_cast %469 : vector<1x1x14x128xf32> to vector<14x128xf32>
    %c0_i32_182 = arith.constant 0 : i32
    %471 = arith.addi %0, %c0_i32_182 : i32
    %c27_i32_183 = arith.constant 27 : i32
    %472 = arith.muli %471, %c27_i32_183 : i32
    %c18_i32 = arith.constant 18 : i32
    %473 = arith.addi %472, %c18_i32 : i32
    %474 = arith.index_cast %473 : i32 to index
    %475 = memref.load %arg2[%474] : memref<162xf32, #tpu.memory_space<smem>>
    %476 = vector.broadcast %475 : f32 to vector<14x128xf32>
    %477 = arith.mulf %470, %476 : vector<14x128xf32>
    %478 = arith.addf %452, %477 : vector<14x128xf32>
    %c1_i32_184 = arith.constant 1 : i32
    %479 = arith.addi %0, %c1_i32_184 : i32
    %c27_i32_185 = arith.constant 27 : i32
    %480 = arith.muli %479, %c27_i32_185 : i32
    %c18_i32_186 = arith.constant 18 : i32
    %481 = arith.addi %480, %c18_i32_186 : i32
    %482 = arith.index_cast %481 : i32 to index
    %483 = memref.load %arg2[%482] : memref<162xf32, #tpu.memory_space<smem>>
    %484 = vector.broadcast %483 : f32 to vector<14x128xf32>
    %485 = arith.mulf %470, %484 : vector<14x128xf32>
    %486 = arith.addf %460, %485 : vector<14x128xf32>
    %c2_i32_187 = arith.constant 2 : i32
    %487 = arith.addi %0, %c2_i32_187 : i32
    %c27_i32_188 = arith.constant 27 : i32
    %488 = arith.muli %487, %c27_i32_188 : i32
    %c18_i32_189 = arith.constant 18 : i32
    %489 = arith.addi %488, %c18_i32_189 : i32
    %490 = arith.index_cast %489 : i32 to index
    %491 = memref.load %arg2[%490] : memref<162xf32, #tpu.memory_space<smem>>
    %492 = vector.broadcast %491 : f32 to vector<14x128xf32>
    %493 = arith.mulf %470, %492 : vector<14x128xf32>
    %494 = arith.addf %468, %493 : vector<14x128xf32>
    %c127_i32_190 = arith.constant 127 : i32
    %495 = tpu.dynamic_rotate %470 by %c127_i32_190 dim 1 : vector<14x128xf32>, i32 -> vector<14x128xf32>
    %c0_i32_191 = arith.constant 0 : i32
    %496 = arith.addi %0, %c0_i32_191 : i32
    %c27_i32_192 = arith.constant 27 : i32
    %497 = arith.muli %496, %c27_i32_192 : i32
    %c19_i32 = arith.constant 19 : i32
    %498 = arith.addi %497, %c19_i32 : i32
    %499 = arith.index_cast %498 : i32 to index
    %500 = memref.load %arg2[%499] : memref<162xf32, #tpu.memory_space<smem>>
    %501 = vector.broadcast %500 : f32 to vector<14x128xf32>
    %502 = arith.mulf %495, %501 : vector<14x128xf32>
    %503 = arith.addf %478, %502 : vector<14x128xf32>
    %c1_i32_193 = arith.constant 1 : i32
    %504 = arith.addi %0, %c1_i32_193 : i32
    %c27_i32_194 = arith.constant 27 : i32
    %505 = arith.muli %504, %c27_i32_194 : i32
    %c19_i32_195 = arith.constant 19 : i32
    %506 = arith.addi %505, %c19_i32_195 : i32
    %507 = arith.index_cast %506 : i32 to index
    %508 = memref.load %arg2[%507] : memref<162xf32, #tpu.memory_space<smem>>
    %509 = vector.broadcast %508 : f32 to vector<14x128xf32>
    %510 = arith.mulf %495, %509 : vector<14x128xf32>
    %511 = arith.addf %486, %510 : vector<14x128xf32>
    %c2_i32_196 = arith.constant 2 : i32
    %512 = arith.addi %0, %c2_i32_196 : i32
    %c27_i32_197 = arith.constant 27 : i32
    %513 = arith.muli %512, %c27_i32_197 : i32
    %c19_i32_198 = arith.constant 19 : i32
    %514 = arith.addi %513, %c19_i32_198 : i32
    %515 = arith.index_cast %514 : i32 to index
    %516 = memref.load %arg2[%515] : memref<162xf32, #tpu.memory_space<smem>>
    %517 = vector.broadcast %516 : f32 to vector<14x128xf32>
    %518 = arith.mulf %495, %517 : vector<14x128xf32>
    %519 = arith.addf %494, %518 : vector<14x128xf32>
    %c126_i32_199 = arith.constant 126 : i32
    %520 = tpu.dynamic_rotate %470 by %c126_i32_199 dim 1 : vector<14x128xf32>, i32 -> vector<14x128xf32>
    %c0_i32_200 = arith.constant 0 : i32
    %521 = arith.addi %0, %c0_i32_200 : i32
    %c27_i32_201 = arith.constant 27 : i32
    %522 = arith.muli %521, %c27_i32_201 : i32
    %c20_i32 = arith.constant 20 : i32
    %523 = arith.addi %522, %c20_i32 : i32
    %524 = arith.index_cast %523 : i32 to index
    %525 = memref.load %arg2[%524] : memref<162xf32, #tpu.memory_space<smem>>
    %526 = vector.broadcast %525 : f32 to vector<14x128xf32>
    %527 = arith.mulf %520, %526 : vector<14x128xf32>
    %528 = arith.addf %503, %527 : vector<14x128xf32>
    %c1_i32_202 = arith.constant 1 : i32
    %529 = arith.addi %0, %c1_i32_202 : i32
    %c27_i32_203 = arith.constant 27 : i32
    %530 = arith.muli %529, %c27_i32_203 : i32
    %c20_i32_204 = arith.constant 20 : i32
    %531 = arith.addi %530, %c20_i32_204 : i32
    %532 = arith.index_cast %531 : i32 to index
    %533 = memref.load %arg2[%532] : memref<162xf32, #tpu.memory_space<smem>>
    %534 = vector.broadcast %533 : f32 to vector<14x128xf32>
    %535 = arith.mulf %520, %534 : vector<14x128xf32>
    %536 = arith.addf %511, %535 : vector<14x128xf32>
    %c2_i32_205 = arith.constant 2 : i32
    %537 = arith.addi %0, %c2_i32_205 : i32
    %c27_i32_206 = arith.constant 27 : i32
    %538 = arith.muli %537, %c27_i32_206 : i32
    %c20_i32_207 = arith.constant 20 : i32
    %539 = arith.addi %538, %c20_i32_207 : i32
    %540 = arith.index_cast %539 : i32 to index
    %541 = memref.load %arg2[%540] : memref<162xf32, #tpu.memory_space<smem>>
    %542 = vector.broadcast %541 : f32 to vector<14x128xf32>
    %543 = arith.mulf %520, %542 : vector<14x128xf32>
    %544 = arith.addf %519, %543 : vector<14x128xf32>
    %c0_208 = arith.constant 0 : index
    %c2_209 = arith.constant 2 : index
    %c1_210 = arith.constant 1 : index
    %c0_211 = arith.constant 0 : index
    %545 = vector.load %arg4[%c0_208, %c2_209, %c1_210, %c0_211] : memref<1x3x16x128xf32, #tpu.memory_space<vmem>>, vector<1x1x14x128xf32>
    %546 = vector.shape_cast %545 : vector<1x1x14x128xf32> to vector<14x128xf32>
    %c0_i32_212 = arith.constant 0 : i32
    %547 = arith.addi %0, %c0_i32_212 : i32
    %c27_i32_213 = arith.constant 27 : i32
    %548 = arith.muli %547, %c27_i32_213 : i32
    %c21_i32 = arith.constant 21 : i32
    %549 = arith.addi %548, %c21_i32 : i32
    %550 = arith.index_cast %549 : i32 to index
    %551 = memref.load %arg2[%550] : memref<162xf32, #tpu.memory_space<smem>>
    %552 = vector.broadcast %551 : f32 to vector<14x128xf32>
    %553 = arith.mulf %546, %552 : vector<14x128xf32>
    %554 = arith.addf %528, %553 : vector<14x128xf32>
    %c1_i32_214 = arith.constant 1 : i32
    %555 = arith.addi %0, %c1_i32_214 : i32
    %c27_i32_215 = arith.constant 27 : i32
    %556 = arith.muli %555, %c27_i32_215 : i32
    %c21_i32_216 = arith.constant 21 : i32
    %557 = arith.addi %556, %c21_i32_216 : i32
    %558 = arith.index_cast %557 : i32 to index
    %559 = memref.load %arg2[%558] : memref<162xf32, #tpu.memory_space<smem>>
    %560 = vector.broadcast %559 : f32 to vector<14x128xf32>
    %561 = arith.mulf %546, %560 : vector<14x128xf32>
    %562 = arith.addf %536, %561 : vector<14x128xf32>
    %c2_i32_217 = arith.constant 2 : i32
    %563 = arith.addi %0, %c2_i32_217 : i32
    %c27_i32_218 = arith.constant 27 : i32
    %564 = arith.muli %563, %c27_i32_218 : i32
    %c21_i32_219 = arith.constant 21 : i32
    %565 = arith.addi %564, %c21_i32_219 : i32
    %566 = arith.index_cast %565 : i32 to index
    %567 = memref.load %arg2[%566] : memref<162xf32, #tpu.memory_space<smem>>
    %568 = vector.broadcast %567 : f32 to vector<14x128xf32>
    %569 = arith.mulf %546, %568 : vector<14x128xf32>
    %570 = arith.addf %544, %569 : vector<14x128xf32>
    %c127_i32_220 = arith.constant 127 : i32
    %571 = tpu.dynamic_rotate %546 by %c127_i32_220 dim 1 : vector<14x128xf32>, i32 -> vector<14x128xf32>
    %c0_i32_221 = arith.constant 0 : i32
    %572 = arith.addi %0, %c0_i32_221 : i32
    %c27_i32_222 = arith.constant 27 : i32
    %573 = arith.muli %572, %c27_i32_222 : i32
    %c22_i32 = arith.constant 22 : i32
    %574 = arith.addi %573, %c22_i32 : i32
    %575 = arith.index_cast %574 : i32 to index
    %576 = memref.load %arg2[%575] : memref<162xf32, #tpu.memory_space<smem>>
    %577 = vector.broadcast %576 : f32 to vector<14x128xf32>
    %578 = arith.mulf %571, %577 : vector<14x128xf32>
    %579 = arith.addf %554, %578 : vector<14x128xf32>
    %c1_i32_223 = arith.constant 1 : i32
    %580 = arith.addi %0, %c1_i32_223 : i32
    %c27_i32_224 = arith.constant 27 : i32
    %581 = arith.muli %580, %c27_i32_224 : i32
    %c22_i32_225 = arith.constant 22 : i32
    %582 = arith.addi %581, %c22_i32_225 : i32
    %583 = arith.index_cast %582 : i32 to index
    %584 = memref.load %arg2[%583] : memref<162xf32, #tpu.memory_space<smem>>
    %585 = vector.broadcast %584 : f32 to vector<14x128xf32>
    %586 = arith.mulf %571, %585 : vector<14x128xf32>
    %587 = arith.addf %562, %586 : vector<14x128xf32>
    %c2_i32_226 = arith.constant 2 : i32
    %588 = arith.addi %0, %c2_i32_226 : i32
    %c27_i32_227 = arith.constant 27 : i32
    %589 = arith.muli %588, %c27_i32_227 : i32
    %c22_i32_228 = arith.constant 22 : i32
    %590 = arith.addi %589, %c22_i32_228 : i32
    %591 = arith.index_cast %590 : i32 to index
    %592 = memref.load %arg2[%591] : memref<162xf32, #tpu.memory_space<smem>>
    %593 = vector.broadcast %592 : f32 to vector<14x128xf32>
    %594 = arith.mulf %571, %593 : vector<14x128xf32>
    %595 = arith.addf %570, %594 : vector<14x128xf32>
    %c126_i32_229 = arith.constant 126 : i32
    %596 = tpu.dynamic_rotate %546 by %c126_i32_229 dim 1 : vector<14x128xf32>, i32 -> vector<14x128xf32>
    %c0_i32_230 = arith.constant 0 : i32
    %597 = arith.addi %0, %c0_i32_230 : i32
    %c27_i32_231 = arith.constant 27 : i32
    %598 = arith.muli %597, %c27_i32_231 : i32
    %c23_i32 = arith.constant 23 : i32
    %599 = arith.addi %598, %c23_i32 : i32
    %600 = arith.index_cast %599 : i32 to index
    %601 = memref.load %arg2[%600] : memref<162xf32, #tpu.memory_space<smem>>
    %602 = vector.broadcast %601 : f32 to vector<14x128xf32>
    %603 = arith.mulf %596, %602 : vector<14x128xf32>
    %604 = arith.addf %579, %603 : vector<14x128xf32>
    %c1_i32_232 = arith.constant 1 : i32
    %605 = arith.addi %0, %c1_i32_232 : i32
    %c27_i32_233 = arith.constant 27 : i32
    %606 = arith.muli %605, %c27_i32_233 : i32
    %c23_i32_234 = arith.constant 23 : i32
    %607 = arith.addi %606, %c23_i32_234 : i32
    %608 = arith.index_cast %607 : i32 to index
    %609 = memref.load %arg2[%608] : memref<162xf32, #tpu.memory_space<smem>>
    %610 = vector.broadcast %609 : f32 to vector<14x128xf32>
    %611 = arith.mulf %596, %610 : vector<14x128xf32>
    %612 = arith.addf %587, %611 : vector<14x128xf32>
    %c2_i32_235 = arith.constant 2 : i32
    %613 = arith.addi %0, %c2_i32_235 : i32
    %c27_i32_236 = arith.constant 27 : i32
    %614 = arith.muli %613, %c27_i32_236 : i32
    %c23_i32_237 = arith.constant 23 : i32
    %615 = arith.addi %614, %c23_i32_237 : i32
    %616 = arith.index_cast %615 : i32 to index
    %617 = memref.load %arg2[%616] : memref<162xf32, #tpu.memory_space<smem>>
    %618 = vector.broadcast %617 : f32 to vector<14x128xf32>
    %619 = arith.mulf %596, %618 : vector<14x128xf32>
    %620 = arith.addf %595, %619 : vector<14x128xf32>
    %c0_238 = arith.constant 0 : index
    %c2_239 = arith.constant 2 : index
    %c2_240 = arith.constant 2 : index
    %c0_241 = arith.constant 0 : index
    %621 = vector.load %arg4[%c0_238, %c2_239, %c2_240, %c0_241] : memref<1x3x16x128xf32, #tpu.memory_space<vmem>>, vector<1x1x14x128xf32>
    %622 = vector.shape_cast %621 : vector<1x1x14x128xf32> to vector<14x128xf32>
    %c0_i32_242 = arith.constant 0 : i32
    %623 = arith.addi %0, %c0_i32_242 : i32
    %c27_i32_243 = arith.constant 27 : i32
    %624 = arith.muli %623, %c27_i32_243 : i32
    %c24_i32 = arith.constant 24 : i32
    %625 = arith.addi %624, %c24_i32 : i32
    %626 = arith.index_cast %625 : i32 to index
    %627 = memref.load %arg2[%626] : memref<162xf32, #tpu.memory_space<smem>>
    %628 = vector.broadcast %627 : f32 to vector<14x128xf32>
    %629 = arith.mulf %622, %628 : vector<14x128xf32>
    %630 = arith.addf %604, %629 : vector<14x128xf32>
    %c1_i32_244 = arith.constant 1 : i32
    %631 = arith.addi %0, %c1_i32_244 : i32
    %c27_i32_245 = arith.constant 27 : i32
    %632 = arith.muli %631, %c27_i32_245 : i32
    %c24_i32_246 = arith.constant 24 : i32
    %633 = arith.addi %632, %c24_i32_246 : i32
    %634 = arith.index_cast %633 : i32 to index
    %635 = memref.load %arg2[%634] : memref<162xf32, #tpu.memory_space<smem>>
    %636 = vector.broadcast %635 : f32 to vector<14x128xf32>
    %637 = arith.mulf %622, %636 : vector<14x128xf32>
    %638 = arith.addf %612, %637 : vector<14x128xf32>
    %c2_i32_247 = arith.constant 2 : i32
    %639 = arith.addi %0, %c2_i32_247 : i32
    %c27_i32_248 = arith.constant 27 : i32
    %640 = arith.muli %639, %c27_i32_248 : i32
    %c24_i32_249 = arith.constant 24 : i32
    %641 = arith.addi %640, %c24_i32_249 : i32
    %642 = arith.index_cast %641 : i32 to index
    %643 = memref.load %arg2[%642] : memref<162xf32, #tpu.memory_space<smem>>
    %644 = vector.broadcast %643 : f32 to vector<14x128xf32>
    %645 = arith.mulf %622, %644 : vector<14x128xf32>
    %646 = arith.addf %620, %645 : vector<14x128xf32>
    %c127_i32_250 = arith.constant 127 : i32
    %647 = tpu.dynamic_rotate %622 by %c127_i32_250 dim 1 : vector<14x128xf32>, i32 -> vector<14x128xf32>
    %c0_i32_251 = arith.constant 0 : i32
    %648 = arith.addi %0, %c0_i32_251 : i32
    %c27_i32_252 = arith.constant 27 : i32
    %649 = arith.muli %648, %c27_i32_252 : i32
    %c25_i32 = arith.constant 25 : i32
    %650 = arith.addi %649, %c25_i32 : i32
    %651 = arith.index_cast %650 : i32 to index
    %652 = memref.load %arg2[%651] : memref<162xf32, #tpu.memory_space<smem>>
    %653 = vector.broadcast %652 : f32 to vector<14x128xf32>
    %654 = arith.mulf %647, %653 : vector<14x128xf32>
    %655 = arith.addf %630, %654 : vector<14x128xf32>
    %c1_i32_253 = arith.constant 1 : i32
    %656 = arith.addi %0, %c1_i32_253 : i32
    %c27_i32_254 = arith.constant 27 : i32
    %657 = arith.muli %656, %c27_i32_254 : i32
    %c25_i32_255 = arith.constant 25 : i32
    %658 = arith.addi %657, %c25_i32_255 : i32
    %659 = arith.index_cast %658 : i32 to index
    %660 = memref.load %arg2[%659] : memref<162xf32, #tpu.memory_space<smem>>
    %661 = vector.broadcast %660 : f32 to vector<14x128xf32>
    %662 = arith.mulf %647, %661 : vector<14x128xf32>
    %663 = arith.addf %638, %662 : vector<14x128xf32>
    %c2_i32_256 = arith.constant 2 : i32
    %664 = arith.addi %0, %c2_i32_256 : i32
    %c27_i32_257 = arith.constant 27 : i32
    %665 = arith.muli %664, %c27_i32_257 : i32
    %c25_i32_258 = arith.constant 25 : i32
    %666 = arith.addi %665, %c25_i32_258 : i32
    %667 = arith.index_cast %666 : i32 to index
    %668 = memref.load %arg2[%667] : memref<162xf32, #tpu.memory_space<smem>>
    %669 = vector.broadcast %668 : f32 to vector<14x128xf32>
    %670 = arith.mulf %647, %669 : vector<14x128xf32>
    %671 = arith.addf %646, %670 : vector<14x128xf32>
    %c126_i32_259 = arith.constant 126 : i32
    %672 = tpu.dynamic_rotate %622 by %c126_i32_259 dim 1 : vector<14x128xf32>, i32 -> vector<14x128xf32>
    %c0_i32_260 = arith.constant 0 : i32
    %673 = arith.addi %0, %c0_i32_260 : i32
    %c27_i32_261 = arith.constant 27 : i32
    %674 = arith.muli %673, %c27_i32_261 : i32
    %c26_i32 = arith.constant 26 : i32
    %675 = arith.addi %674, %c26_i32 : i32
    %676 = arith.index_cast %675 : i32 to index
    %677 = memref.load %arg2[%676] : memref<162xf32, #tpu.memory_space<smem>>
    %678 = vector.broadcast %677 : f32 to vector<14x128xf32>
    %679 = arith.mulf %672, %678 : vector<14x128xf32>
    %680 = arith.addf %655, %679 : vector<14x128xf32>
    %c1_i32_262 = arith.constant 1 : i32
    %681 = arith.addi %0, %c1_i32_262 : i32
    %c27_i32_263 = arith.constant 27 : i32
    %682 = arith.muli %681, %c27_i32_263 : i32
    %c26_i32_264 = arith.constant 26 : i32
    %683 = arith.addi %682, %c26_i32_264 : i32
    %684 = arith.index_cast %683 : i32 to index
    %685 = memref.load %arg2[%684] : memref<162xf32, #tpu.memory_space<smem>>
    %686 = vector.broadcast %685 : f32 to vector<14x128xf32>
    %687 = arith.mulf %672, %686 : vector<14x128xf32>
    %688 = arith.addf %663, %687 : vector<14x128xf32>
    %c2_i32_265 = arith.constant 2 : i32
    %689 = arith.addi %0, %c2_i32_265 : i32
    %c27_i32_266 = arith.constant 27 : i32
    %690 = arith.muli %689, %c27_i32_266 : i32
    %c26_i32_267 = arith.constant 26 : i32
    %691 = arith.addi %690, %c26_i32_267 : i32
    %692 = arith.index_cast %691 : i32 to index
    %693 = memref.load %arg2[%692] : memref<162xf32, #tpu.memory_space<smem>>
    %694 = vector.broadcast %693 : f32 to vector<14x128xf32>
    %695 = arith.mulf %672, %694 : vector<14x128xf32>
    %696 = arith.addf %671, %695 : vector<14x128xf32>
    %c0_268 = arith.constant 0 : index
    %c0_269 = arith.constant 0 : index
    %c0_270 = arith.constant 0 : index
    %c0_271 = arith.constant 0 : index
    %697 = vector.load %arg5[%c0_268, %c0_269, %c0_270, %c0_271] : memref<1x3x14x128xf32, #tpu.memory_space<vmem>>, vector<1x1x14x128xf32>
    %698 = vector.shape_cast %697 : vector<1x1x14x128xf32> to vector<14x128xf32>
    %699 = vector.shape_cast %680 : vector<14x128xf32> to vector<1x1x14x128xf32>
    tpu.vector_store %arg5[%c0_268, %c0_269, %c0_270, %c0_271], %699 {strides = array<i32>} : memref<1x3x14x128xf32, #tpu.memory_space<vmem>>, vector<1x1x14x128xf32>,
    %c0_272 = arith.constant 0 : index
    %c1_273 = arith.constant 1 : index
    %c0_274 = arith.constant 0 : index
    %c0_275 = arith.constant 0 : index
    %700 = vector.load %arg5[%c0_272, %c1_273, %c0_274, %c0_275] : memref<1x3x14x128xf32, #tpu.memory_space<vmem>>, vector<1x1x14x128xf32>
    %701 = vector.shape_cast %700 : vector<1x1x14x128xf32> to vector<14x128xf32>
    %702 = vector.shape_cast %688 : vector<14x128xf32> to vector<1x1x14x128xf32>
    tpu.vector_store %arg5[%c0_272, %c1_273, %c0_274, %c0_275], %702 {strides = array<i32>} : memref<1x3x14x128xf32, #tpu.memory_space<vmem>>, vector<1x1x14x128xf32>,
    %c0_276 = arith.constant 0 : index
    %c2_277 = arith.constant 2 : index
    %c0_278 = arith.constant 0 : index
    %c0_279 = arith.constant 0 : index
    %703 = vector.load %arg5[%c0_276, %c2_277, %c0_278, %c0_279] : memref<1x3x14x128xf32, #tpu.memory_space<vmem>>, vector<1x1x14x128xf32>
    %704 = vector.shape_cast %703 : vector<1x1x14x128xf32> to vector<14x128xf32>
    %705 = vector.shape_cast %696 : vector<14x128xf32> to vector<1x1x14x128xf32>
    tpu.vector_store %arg5[%c0_276, %c2_277, %c0_278, %c0_279], %705 {strides = array<i32>} : memref<1x3x14x128xf32, #tpu.memory_space<vmem>>, vector<1x1x14x128xf32>,
    return
  }
  func.func @transform_0(%arg0: i32, %arg1: i32) -> i32 {
    %c0_i32 = arith.constant 0 : i32
    %c0_i32_0 = arith.constant 0 : i32
    return %c0_i32 : i32
  }
  func.func @transform_1(%arg0: i32, %arg1: i32) -> i32 {
    %c0_i32 = arith.constant 0 : i32
    %c0_i32_0 = arith.constant 0 : i32
    return %c0_i32 : i32
  }
  func.func @transform_2(%arg0: i32, %arg1: i32) -> (i32, i32, i32, i32) {
    %c0_i32 = arith.constant 0 : i32
    %c0_i32_0 = arith.constant 0 : i32
    %c0_i32_1 = arith.constant 0 : i32
    %c0_i32_2 = arith.constant 0 : i32
    return %arg0, %c0_i32, %c0_i32_0, %c0_i32_1 : i32, i32, i32, i32
  }
  func.func @transform_3(%arg0: i32, %arg1: i32) -> (i32, i32, i32, i32) {
    %c0_i32 = arith.constant 0 : i32
    %c0_i32_0 = arith.constant 0 : i32
    %c0_i32_1 = arith.constant 0 : i32
    return %arg0, %arg1, %c0_i32, %c0_i32_0 : i32, i32, i32, i32
  }
}

</mosaic_0001>

<bundles_post_ra>
// kernel: tpu_custom_call.1
= control target key start
LH: loop header
LB: loop body
LE: loop exit
PB: predicated region body
PF: predicated region fallthrough
CT: control target
= control target key end

     0   :  { %s2382_s0 = inlined_call_operand.hbm [shape: f32[162], index: 0, kind: input, shape index: {}]   ;;  %s2383_s1 = inlined_call_operand.hbm [shape: f32[6], index: 1, kind: input, shape index: {}]   ;;  %s2384_s2 = inlined_call_operand.hbm [shape: f32[1,3,16,128], index: 2, kind: input, shape index: {}]   ;;  %s2385_s3 = inlined_call_operand.hbm [shape: f32[1,6,14,128], index: 3, kind: output, shape index: {}]  }
   0x1   :  { %2458 = sst [smem:[#allocation72_spill]] %s2382_s0 }
   0x2   :  { %2459 = sst [smem:[#allocation73_spill]] %s2383_s1 }
   0x3   :  { %2460 = sst [smem:[#allocation74_spill]] %s2384_s2 }
   0x4   :  { %2461 = sst [smem:[#allocation75_spill]] %s2385_s3 }
   0x5   :  { %8 = vsyncpa [#allocation5], 0 }
   0x6   :  { %9 = vsyncpa [#allocation7], 0 }
   0x7   :  { %10 = vsyncpa [#allocation3], 0 }
   0x8   :  { %11 = vsyncpa [#allocation4], 0 }
   0x9   :  { %13 = vsyncpa [#allocation4 + $0x1], 0  ;;  %s1290_s12 = smov 0   ;;  %s1292_s13 = smov 0  }
   0xa   :  { %s1294_s14 = smov 0   ;;  %s1296_s15 = smov 0  }
   0xb   :  { %s1298_s16 = smov 0   ;;  %s1300_s17 = smov 0  }
   0xc LB: > { %2462 = sst [smem:[#allocation14_spill]] %s1238_s12  ;;  %s1000_s18 = sadd.s32 4294967295, %s1258_s17   ;;  %s1258_s17 = sphi %s1300_s17, %s19_s17   ;;  %s1254_s16 = sphi %s1298_s16, %s2717_s16   ;;  %s1250_s15 = sphi %s1296_s15, %s2716_s15   ;;  %s1246_s14 = sphi %s1294_s14, %s2715_s14   ;;  %s1242_s13 = sphi %s1292_s13, %s2714_s13   ;;  %s1238_s12 = sphi %s1290_s12, %s2713_s12  }
   0xd   : > { %2463 = sst [smem:[#allocation15_spill]] %s1242_s13  ;;  %s1001_s19 = sadd.s32 4294967294, %s1258_s17  }
   0xe   : > { %2464 = sst [smem:[#allocation16_spill]] %s1246_s14  ;;  %s28_s20 = sadd.s32 1, %s1254_s16 }
   0xf   : > { %2465 = sst [smem:[#allocation17_spill]] %s1250_s15  ;;  %s108_s21 = sadd.s32 1, %s1246_s14 }
  0x10   : > { %2466 = sst [smem:[#allocation18_spill]] %s1254_s16  ;;  %p29_p0 = scmp.ge.s32.totalorder %s28_s20, 2 }
  0x11   : > { %2467 = sst [smem:[#allocation19_spill]] %s1258_s17  ;;  %p118_p1 = scmp.ne.s32.totalorder %s1246_s14, %s1242_s13 }
  0x12   : > { %p119_p2 = scmp.eq.s32.totalorder %s1000_s18, 1  ;;  %p124_p3 = scmp.ne.s32.totalorder %s1242_s13, %s1238_s12 }
  0x13   : > { %s2719_s20 = smov (%p29_p0, %s28_s20), 0  ;;  %p125_p5 = scmp.eq.s32.totalorder %s1001_s19, 1 }
  0x14   : > { %2468 = sst [smem:[#allocation20_spill]] %s2719_s20  ;;  %p1330_p4 = por %p119_p2, %p118_p1 }
  0x15   : > { %s104_s23 = ssub.s32 %s1254_s16, %s2719_s20  ;;  %p1002_p6 = scmp.ge.s32.totalorder %s1258_s17, 1 }
  0x16   : > { %s2469_s22 = scalar_select %p1330_p4, 1, 0 }
  0x17   : > { %p106_p7 = scmp.eq.s32.totalorder %s104_s23, 0  ;;  %p1337_p8 = por %p125_p5, %p124_p3 }
  0x18   : > { %2470 = sst [smem:[#allocation21_spill]] %s2469_s22  ;;  %p132_p9 = scmp.lt.s32.totalorder %s1258_s17, 3 }
  0x19   : > { %s2471_s24 = scalar_select %p1337_p8, 1, 0 }
  0x1a   : > { %s1343_s25 = scalar_select %p106_p7, %s1246_s14, %s108_s21  }
  0x1b   : > { %2472 = sst [smem:[#allocation22_spill]] %s2471_s24  ;;  %p1345_p10 = pnand %p1002_p6, %p132_p9 }
  0x1c   : > { %2473 = sst [smem:[#allocation23_spill]] %s1343_s25  ;;  %p1349_p11 = scmp.eq.s32.totalorder %s1000_s18, 0 }
  0x1d   : > { %p1036_p12 = pneg %p1345_p10  ;;  %s1260_s28 = smov [#allocation8]  }
  0x1e   : > { %s165_s29 = sshll.u32 %s1260_s28, 4  ;;  %s2477_s0 = sld [smem:[#allocation72_spill]]  ;;  %s1361_s29 = int_to_ptr.vmem [resolvable:$true] %s165_s29 }
  0x1f   : > { %p1357_p13 = pnand %p1349_p11, %p1036_p12 }
  0x21   : > { %p1116_p1 = pneg %p1357_p13 }
  0x24   : > { %s1114_s6 = scalar_lea.hbm %s2477_s0, 32 }
  0x25   : > { %p1115_p0 = scmp.ne.s32.totalorder %s2477_s0, %s1114_s6  ;;  %p1121_p5 = scmp.lt.u32.totalorder %s1114_s6, %s2477_s0 }
  0x27   : > { %p1117_p2 = pnand %p1116_p1, %p1115_p0 }
  0x29   : > { %p1118_p3 = pneg %p1117_p2 }
  0x2b   : > { %p1123_p6 = pnand %p1121_p5, %p1118_p3 }
  0x2d   : > { %1126 = shalt.err (!%p1123_p6)
}
  0x2e   : > { %s1261_s11 = smov [#allocation2]   ;;  %s2478_s1 = sld [smem:[#allocation73_spill]] }
  0x2f   : > { %1039 = dma.hbm_to_smem (!%p1357_p13), %s2477_s0, 32, %s1261_s11, [#allocation5]  }
  0x34   : > { %s1127_s28 = scalar_lea.hbm %s2478_s1, 16 }
  0x35   : > { %p1128_p7 = scmp.ne.s32.totalorder %s2478_s1, %s1127_s28  ;;  %p1134_p0 = scmp.lt.u32.totalorder %s1127_s28, %s2478_s1 }
  0x37   : > { %p1130_p9 = pnand %p1128_p7, %p1116_p1 }
  0x39   : > { %p1131_p12 = pneg %p1130_p9 }
  0x3b   : > { %p1136_p2 = pnand %p1134_p0, %p1131_p12 }
  0x3d   : > { %1139 = shalt.err (!%p1136_p2)
}
  0x3e   : > { %s1262_s8 = smov [#allocation6]   ;;  %s2479_s2 = sld [smem:[#allocation74_spill]] }
  0x3f   : > { %1042 = dma.hbm_to_smem (!%p1357_p13), %s2478_s1, 16, %s1262_s8, [#allocation7]  }
  0x44   : > { %s1140_s19 = scalar_lea.hbm %s2479_s2, 768 }
  0x45   : > { %p1141_p3 = scmp.ne.s32.totalorder %s2479_s2, %s1140_s19  ;;  %p1147_p7 = scmp.lt.u32.totalorder %s1140_s19, %s2479_s2 }
  0x47   : > { %p1143_p5 = pnand %p1141_p3, %p1116_p1 }
  0x49   : > { %p1144_p6 = pneg %p1143_p5 }
  0x4b   : > { %p1149_p9 = pnand %p1147_p7, %p1144_p6 }
  0x4d   : > { %1152 = shalt.err (!%p1149_p9)
}
  0x4e   : > { %s1153_s5 = scalar_lea.vmem %s1361_s29, 768  ;;  %p1161_p8 = scmp.lt.s32.totalorder %s1361_s29, %s1361_s29 }
  0x4f   : > { %p1154_p12 = scmp.ne.s32.totalorder %s1361_s29, %s1153_s5  ;;  %p1162_p3 = scmp.lt.s32.totalorder %s1153_s5, %s1153_s5 }
  0x51   : > { %p1156_p0 = pnand %p1154_p12, %p1116_p1  ;;  %p1163_p5 = por %p1162_p3, %p1161_p8 }
  0x53   : > { %p1157_p2 = pneg %p1156_p0 }
  0x55   : > { %p1164_p4 = pnand %p1163_p5, %p1157_p2 }
  0x57   : > { %1167 = shalt.err (!%p1164_p4)
}
  0x58   : > { %s1263_s6 = smov 128   ;;  %s1264_s7 = smov 8  }
  0x59   : > { %1045 = dma.hbm_to_vmem [thread:$0]  (!%p1357_p13), %s2479_s2, 768, %s1361_s29, [#allocation3], %s1263_s6, %s1263_s6, %s1264_s7  }
  0x5a   : > { %181 = sbr.rel (%p1345_p10) target bundleno = 353 (0x161), region = 32 }
  0x61   : > { %1221 = dma.done.wait (%p1349_p11), [#allocation5], 32  }
  0x62   : > { %1223 = vsyncadd (%p1349_p11), [#allocation5], 4294967264 }
  0x63   : > { %1225 = dma.done.wait (%p1349_p11), [#allocation7], 16  }
  0x64   : > { %1227 = vsyncadd (%p1349_p11), [#allocation7], 4294967280 }
  0x65   : > { %1229 = dma.done.wait (%p1349_p11), [#allocation3], 768  }
  0x66   : > { %1231 = vsyncadd (%p1349_p11), [#allocation3], 4294966528 }
  0x67   : > { %195 = sfence }
  0x68   : > { %v1438_v0 = vld [vmem:[#allocation8] sm:$0xff]  ;;  %s2387_s26 = smov 126   ;;  %s2389_s29 = smov 127   ;;  %v1444_v1 = vld [vmem:[#allocation8 + $0x8] sm:$0x3f]  ;;  %v1476_v7 = vld [vmem:[#allocation8 + $0x10] sm:$0xff] }
  0x69   : > { %267 = vrot.lane.b32.xlu1 %v1438_v0, %s2387_s26  ;;  %242 = vrot.lane.b32.xlu0 %v1438_v0, %s2389_s29  ;;  %v1450_v2 = vld [vmem:[#allocation8 + $0x9] sm:$0x3f]  ;;  %v1452_v3 = vld [vmem:[#allocation8 + $0x1] sm:$0xff]  ;;  %v1474_v6 = vld [vmem:[#allocation8 + $0x18] sm:$0x3f]  ;;  %s1483_s27 = smul.u32 3, %s1250_s15 }
  0x6a   : > { %v1462_v4 = vld [vmem:[#allocation8 + $0xa] sm:$0x3f]  ;;  %v1464_v5 = vld [vmem:[#allocation8 + $0x2] sm:$0xff]  ;;  %v1489_v8 = vld [vmem:[#allocation8 + $0x19] sm:$0x3f]  ;;  %s1500_s11 = smul.u32 81, %s1250_s15 }
  0x6b   : > { %v1491_v9 = vld [vmem:[#allocation8 + $0x11] sm:$0xff]  ;;  %s213_s30 = sadd.s32 1, %s1483_s27  ;;  %s216_s10 = sadd.s32 2, %s1483_s27  ;;  %v1510_v10 = vld [vmem:[#allocation8 + $0x1a] sm:$0x3f]  ;;  %v1550_v13 = vld [vmem:[#allocation8 + $0x20] sm:$0xff] }
  0x6c   : > { %s1502_s18 = smul.u32 27, %s213_s30  ;;  %v1512_v11 = vld [vmem:[#allocation8 + $0x12] sm:$0xff]  ;;  %s271_s21 = sadd.s32 2, %s1500_s11  ;;  %v1548_v12 = vld [vmem:[#allocation8 + $0x28] sm:$0x3f] }
  0x6d   : > { %269 = vrot.lane.b32.xlu1 %v1444_v1, %s2387_s26  ;;  %244 = vrot.lane.b32.xlu0 %v1444_v1, %s2389_s29  ;;  %s1504_s19 = smul.u32 27, %s216_s10  ;;  %s246_s23 = sadd.s32 1, %s1500_s11  ;;  %v1584_v14 = vld [vmem:[#allocation8 + $0x29] sm:$0x3f]  ;;  %v1586_v15 = vld [vmem:[#allocation8 + $0x21] sm:$0xff] }
  0x6e   : > { %s278_s28 = sadd.s32 2, %s1502_s18  ;;  %s1522_s5 = sld [smem:[#allocation2 + %s271_s21]]  ;;  %v1620_v16 = vld [vmem:[#allocation8 + $0x2a] sm:$0x3f]  ;;  %v1622_v17 = vld [vmem:[#allocation8 + $0x22] sm:$0xff] }
  0x6f   : > { %s285_s4 = sadd.s32 2, %s1504_s19  ;;  %s1525_s6 = sld [smem:[#allocation2 + %s1500_s11]] }
  0x70   : > { %s1527_s7 = sld [smem:[#allocation2 + %s246_s23]]  ;;  %s294_s23 = sadd.s32 3, %s1500_s11 }
  0x71   : > { %317 = vrot.lane.b32.xlu1 %v1450_v2, %s2389_s29  ;;  %315 = vrot.lane.b32.xlu0 %v1452_v3, %s2389_s29  ;;  %s1530_s8 = sld [smem:[#allocation6 + %s1483_s27]]  ;;  %s253_s27 = sadd.s32 1, %s1502_s18 }
  0x72   : > { %s1532_s9 = sld [smem:[#allocation2 + %s278_s28]]  ;;  %s319_s28 = sadd.s32 4, %s1500_s11 }
  0x73   : > { %s1536_s0 = sld [smem:[#allocation6 + %s213_s30]]  ;;  %s301_s2 = sadd.s32 3, %s1502_s18 }
  0x74   : > { %2480 = sst [smem:[#allocation24_spill]] %s1522_s5  ;;  %s2486_s20 = smov 127   ;;  %v2455_v27 = vstv %s1522_s5 }
  0x75   : > { %342 = vrot.lane.b32.xlu1 %v1450_v2, %s2387_s26  ;;  %340 = vrot.lane.b32.xlu0 %v1452_v3, %s2387_s26  ;;  %s1538_s1 = sld [smem:[#allocation6 + %s216_s10]]  ;;  %s260_s10 = sadd.s32 1, %s1504_s19  ;;  %v223_v18 = vstv %s1525_s6 }
  0x76   : > { %2481 = sst [smem:[#allocation25_spill]] %s1527_s7  ;;  %s308_s25 = sadd.s32 3, %s1504_s19  ;;  %v224_v21 = vmul.f32 %v223_v18, %v1438_v0  ;;  %v225_v22 = vmul.f32 %v223_v18, %v1444_v1  ;;  %v2452_v32 = vstv %s1527_s7 }
  0x77   : > { %s1545_s21 = sld [smem:[#allocation2 + %s1502_s18]]  ;;  %s333_s3 = sadd.s32 4, %s1504_s19  ;;  %v212_v23 = vstv %s1530_s8 }
  0x78   : > { %2482 = sst [smem:[#allocation26_spill]] %s1532_s9  ;;  %s367_s22 = sadd.s32 6, %s1500_s11  ;;  %v1729_v33 = vadd.f32 %v224_v21, %v212_v23  ;;  %v1731_v34 = vadd.f32 %v225_v22, %v212_v23 }
  0x79   : > { %390 = vrot.lane.b32.xlu1 %v1462_v4, %s2389_s29  ;;  %388 = vrot.lane.b32.xlu0 %v1464_v5, %s2389_s29  ;;  %s1553_s30 = sld [smem:[#allocation2 + %s1504_s19]]  ;;  %v215_v28 = vstv %s1536_s0  ;;  %s626_s8 = sadd.s32 16, %s1504_s19 }
  0x7a   : > { %s1565_s16 = sld [smem:[#allocation2 + %s260_s10]]  ;;  %s344_s10 = sadd.s32 5, %s1500_s11 }
  0x7b   : > { %s1568_s14 = sld [smem:[#allocation2 + %s294_s23]]  ;;  %s351_s23 = sadd.s32 5, %s1502_s18  ;;  %v218_v29 = vstv %s1538_s1 }
  0x7c   : > { %s1570_s24 = sld [smem:[#allocation2 + %s319_s28]]  ;;  %s651_s1 = sadd.s32 17, %s1504_s19 }
  0x7d   : > { %415 = vrot.lane.b32.xlu1 %v1462_v4, %s2387_s26  ;;  %413 = vrot.lane.b32.xlu0 %v1464_v5, %s2387_s26  ;;  %s1572_s12 = sld [smem:[#allocation2 + %s301_s2]]  ;;  %v230_v19 = vstv %s1545_s21  ;;  %s711_s9 = sadd.s32 20, %s1500_s11 }
  0x7e   : > { %s1575_s17 = sld [smem:[#allocation2 + %s308_s25]]  ;;  %s358_s25 = sadd.s32 5, %s1504_s19  ;;  %v231_v24 = vmul.f32 %v230_v19, %v1438_v0  ;;  %v232_v26 = vmul.f32 %v230_v19, %v1444_v1 }
  0x7f   : > { %s1591_s28 = sld [smem:[#allocation2 + %s333_s3]]  ;;  %s374_s3 = sadd.s32 6, %s1502_s18  ;;  %v237_v20 = vstv %s1553_s30 }
  0x80   : > { %2487 = sst [smem:[#allocation29_spill]] %s1565_s16  ;;  %v238_v25 = vmul.f32 %v237_v20, %v1438_v0  ;;  %v239_v30 = vmul.f32 %v237_v20, %v1444_v1  ;;  %v1742_v39 = vadd.f32 %v231_v24, %v215_v28  ;;  %v2454_v41 = vstv %s1565_s16 }
  0x81   : > { %464 = vrot.lane.b32.xlu1 %v1474_v6, %s2389_s29  ;;  %462 = vrot.lane.b32.xlu0 %v1476_v7, %s2389_s29  ;;  %s1594_s15 = sld [smem:[#allocation2 + %s344_s10]]  ;;  %v296_v37 = vstv %s1568_s14  ;;  %v1747_v42 = vadd.f32 %v232_v26, %v215_v28 }
  0x82   : > { %2488 = sst [smem:[#allocation30_spill]] %s1570_s24  ;;  %s392_s24 = sadd.s32 7, %s1500_s11  ;;  %v1744_v40 = vadd.f32 %v238_v25, %v218_v29  ;;  %v1752_v43 = vadd.f32 %v239_v30, %v218_v29  ;;  %v1755_v44 = vmul.f32 %v296_v37, %v1450_v2  ;;  %v1767_v48 = vmul.f32 %v296_v37, %v1452_v3 }
  0x83   : > { %s1596_s13 = sld [smem:[#allocation2 + %s351_s23]]  ;;  %s406_s23 = sadd.s32 7, %s1504_s19  ;;  %v303_v38 = vstv %s1572_s12 }
  0x84   : > { %2489 = sst [smem:[#allocation31_spill]] %s1575_s17  ;;  %v1764_v47 = vmul.f32 %v303_v38, %v1450_v2  ;;  %v1770_v49 = vmul.f32 %v303_v38, %v1452_v3  ;;  %s741_s12 = sadd.s32 21, %s1502_s18 }
  0x85   : > { %489 = vrot.lane.b32.xlu1 %v1474_v6, %s2387_s26  ;;  %487 = vrot.lane.b32.xlu0 %v1476_v7, %s2387_s26  ;;  %2491 = sst [smem:[#allocation33_spill]] %s1591_s28  ;;  %s381_s28 = sadd.s32 6, %s1504_s19 }
  0x86   : > { %s1602_s17 = sld [smem:[#allocation2 + %s358_s25]] }
  0x87   : > { %2492 = sst [smem:[#allocation34_spill]] %s1594_s15 }
  0x88   : > { %s1610_s10 = sld [smem:[#allocation2 + %s392_s24]] }
  0x89   : > { %537 = vrot.lane.b32.xlu1 %v1489_v8, %s2389_s29  ;;  %535 = vrot.lane.b32.xlu0 %v1491_v9, %s2389_s29  ;;  %2493 = sst [smem:[#allocation35_spill]] %s1596_s13  ;;  %s424_s13 = sadd.s32 8, %s1502_s18 }
  0x8a   : > { %s1617_s25 = sld [smem:[#allocation2 + %s374_s3]]  ;;  %s466_s3 = sadd.s32 10, %s1500_s11 }
  0x8b   : > { %s1624_s24 = sld [smem:[#allocation2 + %s381_s28]]  ;;  %s441_s28 = sadd.s32 9, %s1500_s11 }
  0x8c   : > { %2494 = sst [smem:[#allocation36_spill]] %s1602_s17 }
  0x8d   : > { %562 = vrot.lane.b32.xlu1 %v1489_v8, %s2387_s26  ;;  %560 = vrot.lane.b32.xlu0 %v1491_v9, %s2387_s26  ;;  %s1534_s26 = sld [smem:[#allocation2 + %s285_s4]] }
  0x8e   : > { %s1558_s4 = sld [smem:[#allocation2 + %s253_s27]]  ;;  %s326_s27 = sadd.s32 4, %s1502_s18 }
  0x8f   : > { %s1588_s2 = sld [smem:[#allocation2 + %s326_s27]] }
  0x90   : > { %s1605_s27 = sld [smem:[#allocation2 + %s367_s22]]  ;;  %s417_s22 = sadd.s32 8, %s1500_s11 }
  0x91   : > { %610 = vrot.lane.b32.xlu1 %v1510_v10, %s2389_s29  ;;  %608 = vrot.lane.b32.xlu0 %v1512_v11, %s2389_s29  ;;  %s2484_s29 = smov 126   ;;  %2496 = sst [smem:[#allocation38_spill]] %s1610_s10 }
  0x92   : > { %2497 = sst [smem:[#allocation39_spill]] %s1617_s25  ;;  %s578_s25 = sadd.s32 14, %s1504_s19 }
  0x93   : > { %2483 = sst [smem:[#allocation27_spill]] %s1534_s26  ;;  %s2527_s7 = sld [smem:[#allocation39_spill]] }
  0x94   : > { %2485 = sst [smem:[#allocation28_spill]] %s1558_s4  ;;  %v2453_v36 = vstv %s1558_s4  ;;  %s661_s26 = sadd.s32 18, %s1500_s11 }
  0x95   : > { %635 = vrot.lane.b32.xlu1 %v1510_v10, %s2484_s29  ;;  %633 = vrot.lane.b32.xlu0 %v1512_v11, %s2484_s29  ;;  %2490 = sst [smem:[#allocation32_spill]] %s1588_s2  ;;  %s399_s2 = sadd.s32 7, %s1502_s18 }
  0x96   : > { %2495 = sst [smem:[#allocation37_spill]] %s1605_s27  ;;  %s431_s27 = sadd.s32 8, %s1504_s19 }
  0x97   : > { %2498 = sst [smem:[#allocation40_spill]] %s1624_s24  ;;  %s514_s24 = sadd.s32 12, %s1500_s11 }
  0x98   : > { %s1626_s10 = sld [smem:[#allocation2 + %s399_s2]] }
  0x99   : > { %684 = vrot.lane.b32.xlu1 %v1548_v12, %s2486_s20  ;;  %682 = vrot.lane.b32.xlu0 %v1550_v13, %s2486_s20  ;;  %s1628_s17 = sld [smem:[#allocation2 + %s406_s23]]  ;;  %s448_s23 = sadd.s32 9, %s1502_s18  ;;  %v376_v53 = vstv %s2527_s7 }
  0x9a   : > { %s1631_s15 = sld [smem:[#allocation2 + %s417_s22]]  ;;  %s455_s22 = sadd.s32 9, %s1504_s19  ;;  %v1805_v63 = vmul.f32 %v376_v53, %v1462_v4  ;;  %v1811_v1 = vmul.f32 %v376_v53, %v1464_v5 }
  0x9b   : > { %s1640_s2 = sld [smem:[#allocation2 + %s424_s13]]  ;;  %s473_s13 = sadd.s32 10, %s1502_s18 }
  0x9c   : > { %s1706_s6 = sld [smem:[#allocation2 + %s578_s25]]  ;;  %s619_s25 = sadd.s32 16, %s1502_s18 }
  0x9d   : > { %709 = vrot.lane.b32.xlu1 %v1548_v12, %s2484_s29  ;;  %707 = vrot.lane.b32.xlu0 %v1550_v13, %s2484_s29  ;;  %s1739_s0 = sld [smem:[#allocation2 + %s619_s25]]  ;;  %s700_s25 = sadd.s32 19, %s1504_s19 }
  0x9e   : > { %2499 = sst [smem:[#allocation41_spill]] %s1626_s10  ;;  %s2528_s4 = sld [smem:[#allocation40_spill]] }
  0x9f   : > { %2500 = sst [smem:[#allocation42_spill]] %s1628_s17 }
  0xa0   : > { %2501 = sst [smem:[#allocation43_spill]] %s1631_s15 }
  0xa1   : > { %757 = vrot.lane.b32.xlu1 %v1584_v14, %s2486_s20  ;;  %755 = vrot.lane.b32.xlu0 %v1586_v15, %s2486_s20  ;;  %2502 = sst [smem:[#allocation44_spill]] %s1640_s2  ;;  %s505_s2 = sadd.s32 11, %s1504_s19 }
  0xa2   : > { %s1643_s17 = sld [smem:[#allocation2 + %s431_s27]] }
  0xa3   : > { %s1646_s15 = sld [smem:[#allocation2 + %s441_s28]]  ;;  %s491_s28 = sadd.s32 11, %s1500_s11 }
  0xa4   : > { %s1648_s10 = sld [smem:[#allocation2 + %s466_s3]]  ;;  %s498_s3 = sadd.s32 11, %s1502_s18  ;;  %v383_v54 = vstv %s2528_s4 }
  0xa5   : > { %782 = vrot.lane.b32.xlu1 %v1584_v14, %s2484_s29  ;;  %780 = vrot.lane.b32.xlu0 %v1586_v15, %s2484_s29  ;;  %s1657_s27 = sld [smem:[#allocation2 + %s455_s22]]  ;;  %s539_s22 = sadd.s32 13, %s1500_s11  ;;  %v1808_v0 = vmul.f32 %v383_v54, %v1462_v4  ;;  %v1819_v18 = vmul.f32 %v383_v54, %v1464_v5 }
  0xa6   : > { %2519 = sst [smem:[#allocation61_spill]] %s1706_s6  ;;  %s2543_s7 = sld [smem:[#allocation43_spill]] }
  0xa7   : > { %s1749_s5 = sld [smem:[#allocation2 + %s626_s8]]  ;;  %s725_s8 = sadd.s32 20, %s1504_s19 }
  0xa8   : > { %2503 = sst [smem:[#allocation45_spill]] %s1643_s17  ;;  %s480_s17 = sadd.s32 10, %s1504_s19 }
  0xa9   : > { %830 = vrot.lane.b32.xlu1 %v1620_v16, %s2486_s20  ;;  %828 = vrot.lane.b32.xlu0 %v1622_v17, %s2486_s20  ;;  %2504 = sst [smem:[#allocation46_spill]] %s1646_s15 }
  0xaa   : > { %2505 = sst [smem:[#allocation47_spill]] %s1648_s10 }
  0xab   : > { %s1654_s20 = sld [smem:[#allocation2 + %s448_s23]] }
  0xac   : > { %2507 = sst [smem:[#allocation49_spill]] %s1657_s27 }
  0xad   : > { %855 = vrot.lane.b32.xlu1 %v1620_v16, %s2484_s29  ;;  %853 = vrot.lane.b32.xlu0 %v1622_v17, %s2484_s29  ;;  %s1662_s10 = sld [smem:[#allocation2 + %s473_s13]]  ;;  %s521_s13 = sadd.s32 12, %s1502_s18 }
  0xae   : > { %s1665_s15 = sld [smem:[#allocation2 + %s480_s17]]  ;;  %s546_s17 = sadd.s32 13, %s1502_s18 }
  0xaf   : > { %s1668_s29 = sld [smem:[#allocation2 + %s491_s28]]  ;;  %s553_s28 = sadd.s32 13, %s1504_s19 }
  0xb0   : > { %s1670_s23 = sld [smem:[#allocation2 + %s498_s3]]  ;;  %s564_s3 = sadd.s32 14, %s1500_s11 }
  0xb1   : > { %2506 = sst [smem:[#allocation48_spill]] %s1654_s20 }
  0xb2   : > { %s1672_s20 = sld [smem:[#allocation2 + %s505_s2]] }
  0xb3   : > { %2508 = sst [smem:[#allocation50_spill]] %s1662_s10  ;;  %s528_s10 = sadd.s32 12, %s1504_s19 }
  0xb4   : > { %2509 = sst [smem:[#allocation51_spill]] %s1665_s15 }
  0xb5   : > { %2510 = sst [smem:[#allocation52_spill]] %s1668_s29 }
  0xb6   : > { %2511 = sst [smem:[#allocation53_spill]] %s1670_s23  ;;  %s571_s23 = sadd.s32 14, %s1502_s18 }
  0xb7   : > { %s1675_s27 = sld [smem:[#allocation2 + %s514_s24]] }
  0xb8   : > { %2512 = sst [smem:[#allocation54_spill]] %s1672_s20 }
  0xb9   : > { %s1680_s15 = sld [smem:[#allocation2 + %s539_s22]]  ;;  %s587_s22 = sadd.s32 15, %s1500_s11 }
  0xba   : > { %s1683_s29 = sld [smem:[#allocation2 + %s521_s13]]  ;;  %s594_s13 = sadd.s32 15, %s1502_s18 }
  0xbb   : > { %s1686_s2 = sld [smem:[#allocation2 + %s528_s10]] }
  0xbc   : > { %s1688_s20 = sld [smem:[#allocation2 + %s546_s17]]  ;;  %s601_s17 = sadd.s32 15, %s1504_s19 }
  0xbd   : > { %2513 = sst [smem:[#allocation55_spill]] %s1675_s27 }
  0xbe   : > { %s1690_s24 = sld [smem:[#allocation2 + %s553_s28]] }
  0xbf   : > { %2514 = sst [smem:[#allocation56_spill]] %s1680_s15  ;;  %s612_s15 = sadd.s32 16, %s1500_s11 }
  0xc0   : > { %s1694_s27 = sld [smem:[#allocation2 + %s564_s3]]  ;;  %v523_v37 = vstv %s1683_s29 }
  0xc1   : > { %s1701_s10 = sld [smem:[#allocation2 + %s571_s23]]  ;;  %s637_s23 = sadd.s32 17, %s1500_s11  ;;  %v530_v53 = vstv %s1686_s2 }
  0xc2   : > { %2515 = sst [smem:[#allocation57_spill]] %s1688_s20  ;;  %v1900_v24 = vmul.f32 %v530_v53, %v1491_v9  ;;  %s807_s20 = sadd.s32 24, %s1500_s11 }
  0xc3   : > { %s1710_s28 = sld [smem:[#allocation2 + %s587_s22]]  ;;  %s644_s22 = sadd.s32 17, %s1502_s18 }
  0xc4   : > { %2516 = sst [smem:[#allocation58_spill]] %s1690_s24  ;;  %s773_s24 = sadd.s32 22, %s1504_s19 }
  0xc5   : > { %s1712_s21 = sld [smem:[#allocation2 + %s612_s15]] }
  0xc6   : > { %2517 = sst [smem:[#allocation59_spill]] %s1694_s27 }
  0xc7   : > { %2518 = sst [smem:[#allocation60_spill]] %s1701_s10  ;;  %s798_s10 = sadd.s32 23, %s1504_s19 }
  0xc8   : > { %s1717_s30 = sld [smem:[#allocation2 + %s594_s13]] }
  0xc9   : > { %s1724_s15 = sld [smem:[#allocation2 + %s601_s17]]  ;;  %v589_v54 = vstv %s1710_s28 }
  0xca   : > { %s2522_s13 = sld [smem:[#allocation31_spill]]  ;;  %s2524_s17 = sld [smem:[#allocation37_spill]] }
  0xcb   : > { %2520 = sst [smem:[#allocation62_spill]] %s1712_s21  ;;  %s2541_s21 = sld [smem:[#allocation49_spill]] }
  0xcc   : > { %2523 = sst [smem:[#allocation31_spill]] %s1739_s0  ;;  %s693_s0 = sadd.s32 19, %s1502_s18 }
  0xcd   : > { %2526 = sst [smem:[#allocation37_spill]] %s1749_s5  ;;  %s2538_s5 = sld [smem:[#allocation46_spill]] }
  0xce   : > { %s1759_s14 = sld [smem:[#allocation2 + %s637_s23]]  ;;  %s734_s23 = sadd.s32 21, %s1500_s11  ;;  %v596_v38 = vstv %s1717_s30 }
  0xcf   : > { %s1761_s16 = sld [smem:[#allocation2 + %s644_s22]]  ;;  %v603_v22 = vstv %s1724_s15 }
  0xd0   : > { %v310_v46 = vstv %s2522_s13  ;;  %v369_v50 = vstv %s2524_s17  ;;  %s1773_s13 = sld [smem:[#allocation2 + %s651_s1]]  ;;  %s675_s17 = sadd.s32 18, %s1504_s19  ;;  %v1929_v21 = vmul.f32 %v603_v22, %v1510_v10 }
  0xd1   : > { %v1777_v51 = vmul.f32 %v310_v46, %v1450_v2  ;;  %s1782_s22 = sld [smem:[#allocation2 + %s661_s26]]  ;;  %v1787_v56 = vmul.f32 %v310_v46, %v1452_v3  ;;  %v1795_v60 = vmul.f32 %v369_v50, %v1462_v4  ;;  %v1799_v62 = vmul.f32 %v369_v50, %v1464_v5 }
  0xd2   : > { %s2542_s26 = sld [smem:[#allocation42_spill]]  ;;  %v457_v20 = vstv %s2541_s21  ;;  %s2560_s30 = sld [smem:[#allocation37_spill]] }
  0xd3   : > { %v443_v2 = vstv %s2538_s5  ;;  %s1831_s1 = sld [smem:[#allocation2 + %s700_s25]]  ;;  %v1849_v29 = vmul.f32 %v457_v20, %v1474_v6  ;;  %v1860_v50 = vmul.f32 %v457_v20, %v1476_v7  ;;  %s759_s5 = sadd.s32 22, %s1500_s11  ;;  %v1877_v20 = vmul.f32 %v523_v37, %v1489_v8 }
  0xd4   : > { %2530 = sst [smem:[#allocation39_spill]] %s1759_s14  ;;  %s686_s14 = sadd.s32 19, %s1500_s11  ;;  %v1835_v5 = vmul.f32 %v443_v2, %v1474_v6  ;;  %v1839_v25 = vmul.f32 %v443_v2, %v1476_v7  ;;  %v1888_v2 = vmul.f32 %v530_v53, %v1489_v8  ;;  %v1919_v53 = vmul.f32 %v589_v54, %v1512_v11 }
  0xd5   : > { %2532 = sst [smem:[#allocation40_spill]] %s1761_s16  ;;  %s668_s16 = sadd.s32 18, %s1502_s18 }
  0xd6   : > { %2535 = sst [smem:[#allocation63_spill]] %s1773_s13  ;;  %s2540_s13 = sld [smem:[#allocation48_spill]] }
  0xd7   : > { %2537 = sst [smem:[#allocation64_spill]] %s1782_s22  ;;  %s2563_s15 = sld [smem:[#allocation63_spill]] }
  0xd8   : > { %s1801_s4 = sld [smem:[#allocation2 + %s686_s14]] }
  0xd9   : > { %s1814_s3 = sld [smem:[#allocation2 + %s668_s16]]  ;;  %s784_s16 = sadd.s32 23, %s1500_s11 }
  0xda   : > { %s2549_s14 = sld [smem:[#allocation55_spill]]  ;;  %s2557_s28 = sld [smem:[#allocation64_spill]] }
  0xdb   : > { %s1825_s22 = sld [smem:[#allocation2 + %s693_s0]]  ;;  %v268_v45 = vpop.permute.xlu1 %267  ;;  %v243_v35 = vpop.permute.xlu0 %242 }
  0xdc   : > { %v450_v19 = vstv %s2540_s13  ;;  %s1842_s13 = sld [smem:[#allocation2 + %s711_s9]]  ;;  %v249_v55 = vmul.f32 %v2452_v32, %v243_v35  ;;  %v263_v31 = vmul.f32 %v2454_v41, %v243_v35 }
  0xdd   : > { %v1846_v28 = vmul.f32 %v450_v19, %v1474_v6  ;;  %v1852_v30 = vmul.f32 %v450_v19, %v1476_v7  ;;  %s1872_s29 = sld [smem:[#allocation2 + %s725_s8]]  ;;  %v1892_v6 = vmul.f32 %v523_v37, %v1491_v9  ;;  %v1910_v7 = vmul.f32 %v589_v54, %v1510_v10  ;;  %s791_s8 = sadd.s32 23, %s1502_s18 }
  0xde   : > { %2544 = sst [smem:[#allocation46_spill]] %s1801_s4  ;;  %s2562_s21 = sld [smem:[#allocation40_spill]]  ;;  %v251_v57 = vadd.f32 %v249_v55, %v1729_v33 }
  0xdf   : > { %2548 = sst [smem:[#allocation48_spill]] %s1814_s3  ;;  %s718_s3 = sadd.s32 20, %s1502_s18  ;;  %v245_v41 = vpop.permute.xlu0 %244 }
  0xe0   : > { %s1823_s4 = sld [smem:[#allocation2 + %s675_s17]]  ;;  %v516_v26 = vstv %s2549_s14  ;;  %s748_s14 = sadd.s32 21, %s1504_s19  ;;  %v663_v37 = vstv %s2557_s28 }
  0xe1   : > { %s1863_s9 = sld [smem:[#allocation2 + %s718_s3]]  ;;  %v1870_v19 = vmul.f32 %v516_v26, %v1489_v8  ;;  %v1880_v46 = vmul.f32 %v516_v26, %v1491_v9  ;;  %s766_s17 = sadd.s32 22, %s1502_s18  ;;  %v1916_v9 = vmul.f32 %v596_v38, %v1510_v10  ;;  %v1922_v8 = vmul.f32 %v596_v38, %v1512_v11 }
  0xe2   : > { %s1883_s2 = sld [smem:[#allocation2 + %s734_s23]]  ;;  %v1933_v26 = vmul.f32 %v603_v22, %v1512_v11  ;;  %v1949_v11 = vmul.f32 %v663_v37, %v1548_v12  ;;  %v1953_v54 = vmul.f32 %v663_v37, %v1550_v13  ;;  %v256_v10 = vmul.f32 %v2453_v36, %v243_v35 }
  0xe3   : > { %s1885_s3 = sld [smem:[#allocation2 + %s741_s12]]  ;;  %v265_v35 = vadd.f32 %v263_v31, %v1744_v40 }
  0xe4   : > { %s1895_s25 = sld [smem:[#allocation2 + %s748_s14]] }
  0xe5   : > { %s2558_s12 = sld [smem:[#allocation31_spill]]  ;;  %s2559_s0 = sld [smem:[#allocation48_spill]] }
  0xe6   : > { %s1904_s23 = sld [smem:[#allocation2 + %s759_s5]]  ;;  %v677_v61 = vstv %s1823_s4 }
  0xe7   : > { %s2561_s14 = sld [smem:[#allocation39_spill]]  ;;  %s2564_s6 = sld [smem:[#allocation46_spill]]  ;;  %v1968_v22 = vmul.f32 %v677_v61, %v1548_v12  ;;  %v1972_v37 = vmul.f32 %v677_v61, %v1550_v13 }
  0xe8   : > { %s1925_s5 = sld [smem:[#allocation2 + %s766_s17]]  ;;  %v736_v23 = vstv %s1883_s2 }
  0xe9   : > { %s1937_s27 = sld [smem:[#allocation2 + %s807_s20]]  ;;  %v743_v59 = vstv %s1885_s3  ;;  %2567 = vst [vmem:[#allocation65_spill] sm:$0xff] %v1972_v37  ;;  %v1988_v61 = vmul.f32 %v736_v23, %v1586_v15 }
  0xea   : > { %s1943_s17 = sld [smem:[#allocation2 + %s773_s24]]  ;;  %v750_v58 = vstv %s1895_s25 }
  0xeb   : > { %v670_v4 = vstv %s2559_s0  ;;  %s1945_s28 = sld [smem:[#allocation2 + %s784_s16]]  ;;  %s832_s16 = sadd.s32 25, %s1500_s11  ;;  %2575 = vst [vmem:[#allocation68_spill] sm:$0xff] %v1988_v61  ;;  %v1993_v52 = vmul.f32 %v750_v58, %v1584_v14 }
  0xec   : > { %v1956_v3 = vmul.f32 %v670_v4, %v1548_v12  ;;  %v1959_v38 = vmul.f32 %v670_v4, %v1550_v13  ;;  %s1963_s20 = sld [smem:[#allocation2 + %s791_s8]]  ;;  %v1981_v12 = vmul.f32 %v736_v23, %v1584_v14  ;;  %v1985_v13 = vmul.f32 %v743_v59, %v1584_v14 }
  0xed   : > { %s1965_s24 = sld [smem:[#allocation2 + %s798_s10]]  ;;  %2576 = vst [vmem:[#allocation69_spill] sm:$0xff] %v1993_v52  ;;  %v1997_v4 = vmul.f32 %v743_v59, %v1586_v15  ;;  %v2006_v23 = vmul.f32 %v750_v58, %v1586_v15  ;;  %v274_v14 = vmul.f32 %v2455_v27, %v268_v45  ;;  %v258_v15 = vadd.f32 %v256_v10, %v1742_v39  ;;  %v270_v58 = vpop.permute.xlu1 %269 }
  0xee   : > { %s2566_s4 = sld [smem:[#allocation25_spill]]  ;;  %s2568_s0 = sld [smem:[#allocation28_spill]]  ;;  %2571 = vst [vmem:[#allocation66_spill] sm:$0xff] %v1981_v12  ;;  %2573 = vst [vmem:[#allocation67_spill] sm:$0xff] %v1985_v13 }
  0xef   : > { %s2569_s2 = sld [smem:[#allocation29_spill]]  ;;  %s2570_s10 = sld [smem:[#allocation24_spill]]  ;;  %2577 = vst [vmem:[#allocation70_spill] sm:$0xff] %v1997_v4  ;;  %2578 = vst [vmem:[#allocation71_spill] sm:$0xff] %v2006_v23  ;;  %v809_v32 = vstv %s1937_s27  ;;  %v276_v27 = vadd.f32 %v274_v14, %v251_v57 }
  0xf0   : > { %s2572_s3 = sld [smem:[#allocation26_spill]]  ;;  %s2574_s25 = sld [smem:[#allocation27_spill]]  ;;  %v2023_v55 = vmul.f32 %v809_v32, %v1620_v16 }
  0xf1   : > { %s1999_s8 = sld [smem:[#allocation2 + %s832_s16]]  ;;  %s814_s27 = sadd.s32 24, %s1502_s18  ;;  %v299_v14 = vadd.f32 %v1767_v48, %v276_v27 }
  0xf2   : > { %s2586_s16 = sld [smem:[#allocation30_spill]] }
  0xf3   : > { %2565 = sst [smem:[#allocation49_spill]] %s1965_s24  ;;  %s2587_s24 = sld [smem:[#allocation32_spill]] }
  0xf4   : > { %v2581_v59 = vstv %s2566_s4  ;;  %s2588_s4 = sld [smem:[#allocation33_spill]] }
  0xf5   : > { %v2583_v39 = vstv %s2570_s10  ;;  %v2585_v37 = vstv %s2569_s2  ;;  %s2590_s2 = sld [smem:[#allocation34_spill]]  ;;  %s2592_s10 = sld [smem:[#allocation35_spill]] }
  0xf6   : > { %v2579_v61 = vstv %s2572_s3  ;;  %v2580_v36 = vstv %s2574_s25  ;;  %v275_v10 = vmul.f32 %v2583_v39, %v270_v58  ;;  %v2584_v31 = vstv %s2572_s3  ;;  %s2595_s3 = sld [smem:[#allocation36_spill]] }
  0xf7   : > { %v281_v52 = vmul.f32 %v2579_v61, %v268_v45  ;;  %v288_v13 = vmul.f32 %v2580_v36, %v268_v45  ;;  %v250_v36 = vmul.f32 %v2581_v59, %v245_v41  ;;  %v2582_v45 = vstv %s2568_s0  ;;  %v316_v59 = vpop.permute.xlu0 %315  ;;  %s2041_s0 = sld [smem:[#allocation2 + %s814_s27]] }
  0xf8   : > { %v257_v12 = vmul.f32 %v2582_v45, %v245_v41  ;;  %v282_v40 = vmul.f32 %v2584_v31, %v270_v58  ;;  %v264_v57 = vmul.f32 %v2585_v37, %v245_v41  ;;  %v2589_v41 = vstv %s2574_s25  ;;  %s2604_s25 = sld [smem:[#allocation41_spill]]  ;;  %s2609_s27 = sld [smem:[#allocation44_spill]] }
  0xf9   : > { %v283_v4 = vadd.f32 %v281_v52, %v258_v15  ;;  %v290_v61 = vadd.f32 %v288_v13, %v265_v35  ;;  %v252_v33 = vadd.f32 %v250_v36, %v1731_v34  ;;  %v318_v13 = vpop.permute.xlu1 %317  ;;  %v289_v37 = vmul.f32 %v2589_v41, %v270_v58 }
  0xfa   : > { %v259_v52 = vadd.f32 %v257_v12, %v1747_v42  ;;  %v266_v27 = vadd.f32 %v264_v57, %v1752_v43  ;;  %v2048_v34 = vmul.f32 %v809_v32, %v1622_v17  ;;  %v2591_v36 = vstv %s2586_s16  ;;  %s2611_s16 = sld [smem:[#allocation45_spill]] }
  0xfb   : > { %v306_v15 = vadd.f32 %v1770_v49, %v283_v4  ;;  %v313_v35 = vadd.f32 %v1787_v56, %v290_v61  ;;  %v277_v42 = vadd.f32 %v275_v10, %v252_v33  ;;  %v322_v45 = vmul.f32 %v2591_v36, %v316_v59 }
  0xfc   : > { %v284_v12 = vadd.f32 %v282_v40, %v259_v52  ;;  %v2593_v49 = vstv %s2587_s24  ;;  %v291_v56 = vadd.f32 %v289_v37, %v266_v27  ;;  %v2594_v61 = vmov %v2591_v36  ;;  %v341_v36 = vpop.permute.xlu0 %340  ;;  %s2602_s24 = sld [smem:[#allocation38_spill]] }
  0xfd   : > { %v329_v4 = vmul.f32 %v2593_v49, %v316_v59  ;;  %v323_v39 = vmul.f32 %v2594_v61, %v318_v13  ;;  %v2596_v31 = vmov %v2593_v49  ;;  %v2597_v43 = vstv %s2588_s4  ;;  %v343_v41 = vpop.permute.xlu1 %342  ;;  %s821_s4 = sadd.s32 24, %s1504_s19 }
  0xfe   : > { %v330_v58 = vmul.f32 %v2596_v31, %v318_v13  ;;  %v336_v57 = vmul.f32 %v2597_v43, %v316_v59  ;;  %v300_v32 = vadd.f32 %v1755_v44, %v277_v42  ;;  %v307_v33 = vadd.f32 %v1764_v47, %v284_v12 }
  0xff   : > { %v2598_v10 = vmov %v2597_v43  ;;  %v324_v52 = vadd.f32 %v322_v45, %v299_v14  ;;  %v314_v37 = vadd.f32 %v1777_v51, %v291_v56  ;;  %v331_v27 = vadd.f32 %v329_v4, %v306_v15 }
 0x100   : > { %v337_v40 = vmul.f32 %v2598_v10, %v318_v13  ;;  %v2599_v49 = vstv %s2590_s2  ;;  %v2600_v31 = vstv %s2592_s10  ;;  %v325_v59 = vadd.f32 %v323_v39, %v300_v32  ;;  %v389_v39 = vpop.permute.xlu0 %388  ;;  %s2619_s2 = sld [smem:[#allocation47_spill]]  ;;  %s2620_s10 = sld [smem:[#allocation50_spill]] }
 0x101   : > { %v348_v61 = vmul.f32 %v2599_v49, %v343_v41  ;;  %v355_v48 = vmul.f32 %v2600_v31, %v343_v41  ;;  %v332_v43 = vadd.f32 %v330_v58, %v307_v33  ;;  %v2601_v44 = vstv %s2595_s3  ;;  %s2114_s3 = sld [smem:[#allocation2 + %s821_s4]] }
 0x102   : > { %v362_v42 = vmul.f32 %v2601_v44, %v343_v41  ;;  %v2603_v47 = vmov %v2599_v49  ;;  %v339_v23 = vadd.f32 %v337_v40, %v314_v37  ;;  %v338_v14 = vadd.f32 %v336_v57, %v313_v35  ;;  %v391_v49 = vpop.permute.xlu1 %390  ;;  %s2640_s4 = sld [smem:[#allocation58_spill]] }
 0x103   : > { %v347_v12 = vmul.f32 %v2603_v47, %v341_v36  ;;  %v2605_v13 = vmov %v2600_v31  ;;  %v2606_v51 = vmov %v2601_v44  ;;  %v350_v4 = vadd.f32 %v348_v61, %v325_v59 }
 0x104   : > { %v354_v45 = vmul.f32 %v2605_v13, %v341_v36  ;;  %v361_v15 = vmul.f32 %v2606_v51, %v341_v36  ;;  %v357_v56 = vadd.f32 %v355_v48, %v332_v43  ;;  %v816_v58 = vstv %s2041_s0  ;;  %s846_s0 = sadd.s32 25, %s1504_s19 }
 0x105   : > { %v349_v10 = vadd.f32 %v347_v12, %v324_v52  ;;  %v364_v32 = vadd.f32 %v362_v42, %v339_v23  ;;  %v2607_v40 = vstv %s2602_s24  ;;  %v373_v35 = vadd.f32 %v1795_v60, %v350_v4  ;;  %v414_v12 = vpop.permute.xlu0 %413  ;;  %s2627_s24 = sld [smem:[#allocation53_spill]] }
 0x106   : > { %v356_v33 = vadd.f32 %v354_v45, %v331_v27  ;;  %v363_v41 = vadd.f32 %v361_v15, %v338_v14  ;;  %v396_v37 = vmul.f32 %v2607_v40, %v391_v49  ;;  %v380_v57 = vadd.f32 %v1805_v63, %v357_v56  ;;  %v416_v47 = vpop.permute.xlu1 %415 }
 0x107   : > { %v2608_v36 = vstv %s2604_s25  ;;  %v2610_v52 = vstv %s2542_s26  ;;  %v387_v31 = vadd.f32 %v1808_v0, %v364_v32  ;;  %v372_v23 = vadd.f32 %v1799_v62, %v349_v10  ;;  %s2622_s26 = sld [smem:[#allocation51_spill]]  ;;  %s2629_s25 = sld [smem:[#allocation54_spill]] }
 0x108   : > { %v403_v48 = vmul.f32 %v2608_v36, %v391_v49  ;;  %v410_v61 = vmul.f32 %v2610_v52, %v391_v49  ;;  %v379_v27 = vadd.f32 %v1811_v1, %v356_v33  ;;  %v386_v59 = vadd.f32 %v1819_v18, %v363_v41 }
 0x109   : > { %v398_v60 = vadd.f32 %v396_v37, %v373_v35  ;;  %v2612_v43 = vmov %v2607_v40  ;;  %v2613_v63 = vmov %v2608_v36  ;;  %v2097_v14 = vmul.f32 %v816_v58, %v1620_v16 }
 0x10a   : > { %v395_v44 = vmul.f32 %v2612_v43, %v389_v39  ;;  %v402_v42 = vmul.f32 %v2613_v63, %v389_v39  ;;  %v405_v0 = vadd.f32 %v403_v48, %v380_v57  ;;  %v2614_v62 = vmov %v2610_v52 }
 0x10b   : > { %v409_v13 = vmul.f32 %v2614_v62, %v389_v39  ;;  %v2615_v1 = vstv %s2543_s7  ;;  %v2616_v51 = vstv %s2609_s27  ;;  %v412_v15 = vadd.f32 %v410_v61, %v387_v31  ;;  %v465_v61 = vpop.permute.xlu1 %464  ;;  %v463_v31 = vpop.permute.xlu0 %462  ;;  %s2625_s7 = sld [smem:[#allocation52_spill]]  ;;  %s2637_s27 = sld [smem:[#allocation56_spill]] }
 0x10c   : > { %v421_v45 = vmul.f32 %v2615_v1, %v416_v47  ;;  %v428_v18 = vmul.f32 %v2616_v51, %v416_v47  ;;  %v397_v4 = vadd.f32 %v395_v44, %v372_v23  ;;  %v2617_v56 = vstv %s2611_s16  ;;  %s2639_s16 = sld [smem:[#allocation57_spill]] }
 0x10d   : > { %v435_v10 = vmul.f32 %v2617_v56, %v416_v47  ;;  %v2618_v49 = vmov %v2615_v1  ;;  %v404_v33 = vadd.f32 %v402_v42, %v379_v27  ;;  %v2621_v37 = vmov %v2616_v51 }
 0x10e   : > { %v420_v32 = vmul.f32 %v2618_v49, %v414_v12  ;;  %v423_v41 = vadd.f32 %v421_v45, %v398_v60  ;;  %v430_v40 = vadd.f32 %v428_v18, %v405_v0  ;;  %v427_v35 = vmul.f32 %v2621_v37, %v414_v12 }
 0x10f   : > { %v411_v39 = vadd.f32 %v409_v13, %v386_v59  ;;  %v437_v57 = vadd.f32 %v435_v10, %v412_v15  ;;  %v2623_v48 = vmov %v2617_v56  ;;  %v2624_v43 = vstv %s2619_s2  ;;  %v488_v56 = vpop.permute.xlu0 %487  ;;  %s839_s2 = sadd.s32 25, %s1502_s18 }
 0x110   : > { %v422_v36 = vadd.f32 %v420_v32, %v397_v4  ;;  %v434_v52 = vmul.f32 %v2623_v48, %v414_v12  ;;  %v429_v23 = vadd.f32 %v427_v35, %v404_v33  ;;  %v447_v27 = vadd.f32 %v1835_v5, %v423_v41  ;;  %v490_v4 = vpop.permute.xlu1 %489 }
 0x111   : > { %v454_v60 = vadd.f32 %v1846_v28, %v430_v40  ;;  %v470_v44 = vmul.f32 %v2624_v43, %v465_v61  ;;  %v461_v59 = vadd.f32 %v1849_v29, %v437_v57  ;;  %v2626_v42 = vstv %s2620_s10  ;;  %s2644_s10 = sld [smem:[#allocation59_spill]] }
 0x112   : > { %v436_v63 = vadd.f32 %v434_v52, %v411_v39  ;;  %v477_v47 = vmul.f32 %v2626_v42, %v465_v61  ;;  %v2628_v12 = vstv %s2622_s26  ;;  %v446_v13 = vadd.f32 %v1839_v25, %v422_v36  ;;  %s2646_s26 = sld [smem:[#allocation60_spill]] }
 0x113   : > { %v484_v0 = vmul.f32 %v2628_v12, %v465_v61  ;;  %v472_v62 = vadd.f32 %v470_v44, %v447_v27  ;;  %v453_v5 = vadd.f32 %v1852_v30, %v429_v23  ;;  %v2630_v28 = vmov %v2624_v43 }
 0x114   : > { %v469_v1 = vmul.f32 %v2630_v28, %v463_v31  ;;  %v479_v45 = vadd.f32 %v477_v47, %v454_v60  ;;  %v460_v29 = vadd.f32 %v1860_v50, %v436_v63  ;;  %v2631_v18 = vmov %v2626_v42  ;;  %v538_v44 = vpop.permute.xlu1 %537  ;;  %v536_v63 = vpop.permute.xlu0 %535 }
 0x115   : > { %v486_v51 = vadd.f32 %v484_v0, %v461_v59  ;;  %v476_v15 = vmul.f32 %v2631_v18, %v463_v31  ;;  %v2632_v49 = vmov %v2628_v12  ;;  %v2633_v33 = vstv %s2625_s7  ;;  %s2647_s7 = sld [smem:[#allocation61_spill]] }
 0x116   : > { %v471_v10 = vadd.f32 %v469_v1, %v446_v13  ;;  %v483_v32 = vmul.f32 %v2632_v49, %v463_v31  ;;  %v495_v25 = vmul.f32 %v2633_v33, %v490_v4  ;;  %v2634_v41 = vstv %s2627_s24  ;;  %s2166_s24 = sld [smem:[#allocation2 + %s839_s2]] }
 0x117   : > { %v502_v40 = vmul.f32 %v2634_v41, %v490_v4  ;;  %v478_v30 = vadd.f32 %v476_v15, %v453_v5  ;;  %v2635_v37 = vstv %s2629_s25  ;;  %v2636_v39 = vmov %v2633_v33  ;;  %s2656_s25 = sld [smem:[#allocation62_spill]] }
 0x118   : > { %v509_v35 = vmul.f32 %v2635_v37, %v490_v4  ;;  %v494_v57 = vmul.f32 %v2636_v39, %v488_v56  ;;  %v2638_v36 = vmov %v2634_v41  ;;  %v485_v48 = vadd.f32 %v483_v32, %v460_v29  ;;  %v563_v33 = vpop.permute.xlu1 %562 }
 0x119   : > { %v501_v50 = vmul.f32 %v2638_v36, %v488_v56  ;;  %v497_v52 = vadd.f32 %v495_v25, %v472_v62  ;;  %v504_v61 = vadd.f32 %v502_v40, %v479_v45  ;;  %v2641_v31 = vmov %v2635_v37  ;;  %v561_v25 = vpop.permute.xlu0 %560 }
 0x11a   : > { %v508_v23 = vmul.f32 %v2641_v31, %v488_v56  ;;  %v511_v27 = vadd.f32 %v509_v35, %v486_v51  ;;  %v496_v60 = vadd.f32 %v494_v57, %v471_v10  ;;  %v823_v59 = vstv %s2114_s3 }
 0x11b   : > { %v503_v43 = vadd.f32 %v501_v50, %v478_v30  ;;  %v520_v47 = vadd.f32 %v1870_v19, %v497_v52  ;;  %v527_v12 = vadd.f32 %v1877_v20, %v504_v61  ;;  %v2642_v0 = vstv %s2637_s27 }
 0x11c   : > { %v510_v42 = vadd.f32 %v508_v23, %v485_v48  ;;  %v543_v62 = vmul.f32 %v2642_v0, %v538_v44  ;;  %v534_v13 = vadd.f32 %v1888_v2, %v511_v27  ;;  %v2643_v5 = vstv %s2639_s16  ;;  %s1267_s16 = smov [#allocation9]  }
 0x11d   : > { %v550_v28 = vmul.f32 %v2643_v5, %v538_v44  ;;  %v2645_v1 = vstv %s2640_s4  ;;  %v519_v51 = vadd.f32 %v1880_v46, %v496_v60  ;;  %v526_v18 = vadd.f32 %v1892_v6, %v503_v43  ;;  %s1172_s4 = sshll.u32 %s1267_s16, 4  ;;  %s1173_s4 = int_to_ptr.vmem [resolvable:$false] %s1172_s4 }
 0x11e   : > { %v557_v45 = vmul.f32 %v2645_v1, %v538_v44  ;;  %v545_v29 = vadd.f32 %v543_v62, %v520_v47  ;;  %v533_v19 = vadd.f32 %v1900_v24, %v510_v42  ;;  %v2648_v20 = vmov %v2642_v0  ;;  %v611_v44 = vpop.permute.xlu1 %610  ;;  %s1174_s2 = scalar_lea.vmem %s1173_s4, 1536 }
 0x11f   : > { %v542_v15 = vmul.f32 %v2648_v20, %v536_v63  ;;  %v552_v4 = vadd.f32 %v550_v28, %v527_v12  ;;  %v2649_v56 = vmov %v2643_v5  ;;  %v2650_v49 = vmov %v2645_v1 }
 0x120   : > { %v559_v2 = vadd.f32 %v557_v45, %v534_v13  ;;  %v549_v10 = vmul.f32 %v2649_v56, %v536_v63  ;;  %v556_v32 = vmul.f32 %v2650_v49, %v536_v63  ;;  %v2651_v41 = vstv %s2644_s10  ;;  %v609_v63 = vpop.permute.xlu0 %608 }
 0x121   : > { %v544_v46 = vadd.f32 %v542_v15, %v519_v51  ;;  %v568_v6 = vmul.f32 %v2651_v41, %v563_v33  ;;  %v2652_v40 = vstv %s2646_s26  ;;  %v2653_v30 = vstv %s2647_s7 }
 0x122   : > { %v575_v24 = vmul.f32 %v2652_v40, %v563_v33  ;;  %v582_v37 = vmul.f32 %v2653_v30, %v563_v33  ;;  %v551_v35 = vadd.f32 %v549_v10, %v526_v18  ;;  %v558_v39 = vadd.f32 %v556_v32, %v533_v19  ;;  %v636_v56 = vpop.permute.xlu1 %635 }
 0x123   : > { %v2654_v57 = vmov %v2651_v41  ;;  %v2655_v50 = vmov %v2652_v40  ;;  %v570_v52 = vadd.f32 %v568_v6, %v545_v29  ;;  %v2657_v23 = vmov %v2653_v30 }
 0x124   : > { %v567_v36 = vmul.f32 %v2654_v57, %v561_v25  ;;  %v574_v48 = vmul.f32 %v2655_v50, %v561_v25  ;;  %v577_v61 = vadd.f32 %v575_v24, %v552_v4  ;;  %v584_v31 = vadd.f32 %v582_v37, %v559_v2  ;;  %v634_v10 = vpop.permute.xlu0 %633 }
 0x125   : > { %v581_v27 = vmul.f32 %v2657_v23, %v561_v25  ;;  %v2183_v42 = vmul.f32 %v823_v59, %v1620_v16  ;;  %v2188_v47 = vmul.f32 %v816_v58, %v1622_v17  ;;  %v593_v0 = vadd.f32 %v1910_v7, %v570_v52 }
 0x126   : > { %v569_v60 = vadd.f32 %v567_v36, %v544_v46  ;;  %v576_v43 = vadd.f32 %v574_v48, %v551_v35  ;;  %v600_v62 = vadd.f32 %v1916_v9, %v577_v61  ;;  %v607_v13 = vadd.f32 %v1929_v21, %v584_v31  ;;  %v685_v31 = vpop.permute.xlu1 %684 }
 0x127   : > { %v583_v12 = vadd.f32 %v581_v27, %v558_v39  ;;  %v2658_v5 = vstv %s2656_s25  ;;  %v2659_v1 = vstv %s2558_s12  ;;  %v2660_v16 = vstv %s2560_s30  ;;  %s857_s12 = sadd.s32 26, %s1500_s11  ;;  %s2223_s11 = sld [smem:[#allocation2 + %s846_s0]] }
 0x128   : > { %v616_v28 = vmul.f32 %v2658_v5, %v611_v44  ;;  %v623_v45 = vmul.f32 %v2659_v1, %v611_v44  ;;  %v630_v51 = vmul.f32 %v2660_v16, %v611_v44  ;;  %v592_v58 = vadd.f32 %v1919_v53, %v569_v60  ;;  %v683_v23 = vpop.permute.xlu0 %682  ;;  %s864_s30 = sadd.s32 26, %s1502_s18 }
 0x129   : > { %v599_v29 = vadd.f32 %v1922_v8, %v576_v43  ;;  %v606_v7 = vadd.f32 %v1933_v26, %v583_v12  ;;  %v2661_v18 = vmov %v2658_v5  ;;  %v2662_v21 = vmov %v2659_v1  ;;  %v2673_v1 = vld [vmem:[#allocation65_spill] sm:$0xff]  ;;  %s2251_s18 = sld [smem:[#allocation2 + %s864_s30]] }
 0x12a   : > { %v615_v9 = vmul.f32 %v2661_v18, %v609_v63  ;;  %v622_v19 = vmul.f32 %v2662_v21, %v609_v63  ;;  %v618_v20 = vadd.f32 %v616_v28, %v593_v0  ;;  %v625_v15 = vadd.f32 %v623_v45, %v600_v62 }
 0x12b   : > { %v2663_v4 = vmov %v2660_v16  ;;  %v841_v53 = vstv %s2166_s24  ;;  %v632_v49 = vadd.f32 %v630_v51, %v607_v13  ;;  %v2664_v8 = vstv %s2561_s14 }
 0x12c   : > { %v629_v2 = vmul.f32 %v2663_v4, %v609_v63  ;;  %v617_v32 = vadd.f32 %v615_v9, %v592_v58  ;;  %v641_v33 = vmul.f32 %v2664_v8, %v636_v56  ;;  %v2665_v26 = vstv %s2562_s21  ;;  %s2230_s21 = sld [smem:[#allocation2 + %s857_s12]]  ;;  %v710_v9 = vpop.permute.xlu1 %709  ;;  %v708_v21 = vpop.permute.xlu0 %707 }
 0x12d   : > { %v648_v25 = vmul.f32 %v2665_v26, %v636_v56  ;;  %v624_v46 = vadd.f32 %v622_v19, %v599_v29  ;;  %v2666_v41 = vstv %s2563_s15  ;;  %v2667_v40 = vmov %v2664_v8 }
 0x12e   : > { %v655_v6 = vmul.f32 %v2666_v41, %v636_v56  ;;  %v640_v24 = vmul.f32 %v2667_v40, %v634_v10  ;;  %v2668_v30 = vmov %v2665_v26  ;;  %v631_v35 = vadd.f32 %v629_v2, %v606_v7 }
 0x12f   : > { %v647_v37 = vmul.f32 %v2668_v30, %v634_v10  ;;  %v643_v39 = vadd.f32 %v641_v33, %v618_v20  ;;  %v650_v57 = vadd.f32 %v648_v25, %v625_v15  ;;  %v2669_v36 = vmov %v2666_v41 }
 0x130   : > { %v654_v50 = vmul.f32 %v2669_v36, %v634_v10  ;;  %v657_v48 = vadd.f32 %v655_v6, %v632_v49  ;;  %v642_v52 = vadd.f32 %v640_v24, %v617_v32  ;;  %v2228_v27 = vmul.f32 %v823_v59, %v1622_v17  ;;  %v758_v30 = vpop.permute.xlu1 %757  ;;  %v2683_v36 = vld [vmem:[#allocation66_spill] sm:$0xff] }
 0x131   : > { %v649_v61 = vadd.f32 %v647_v37, %v624_v46  ;;  %v667_v43 = vadd.f32 %v1949_v11, %v643_v39  ;;  %v674_v44 = vadd.f32 %v1956_v3, %v650_v57  ;;  %v2670_v63 = vstv %s2564_s6  ;;  %s871_s6 = sadd.s32 26, %s1504_s19  ;;  %v756_v37 = vpop.permute.xlu0 %755 }
 0x132   : > { %v656_v60 = vadd.f32 %v654_v50, %v631_v35  ;;  %v690_v12 = vmul.f32 %v2670_v63, %v685_v31  ;;  %v681_v0 = vadd.f32 %v1968_v22, %v657_v48  ;;  %v2671_v62 = vstv %s1825_s22  ;;  %s2268_s19 = sld [smem:[#allocation2 + %s871_s6]]  ;;  %v2684_v48 = vld [vmem:[#allocation67_spill] sm:$0xff] }
 0x133   : > { %v697_v13 = vmul.f32 %v2671_v62, %v685_v31  ;;  %v2672_v5 = vstv %s1831_s1  ;;  %v666_v59 = vadd.f32 %v1953_v54, %v642_v52  ;;  %v673_v11 = vadd.f32 %v1959_v38, %v649_v61  ;;  %s2685_s22 = sld [smem:[#allocation15_spill]]  ;;  %v2686_v61 = vld [vmem:[#allocation69_spill] sm:$0xff]  ;;  %s2693_s1 = sld [smem:[#allocation49_spill]] }
 0x134   : > { %v704_v17 = vmul.f32 %v2672_v5, %v685_v31  ;;  %v692_v28 = vadd.f32 %v690_v12, %v667_v43  ;;  %v680_v3 = vadd.f32 %v2673_v1, %v656_v60  ;;  %v2674_v45 = vmov %v2670_v63 }
 0x135   : > { %v689_v16 = vmul.f32 %v2674_v45, %v683_v23  ;;  %v699_v22 = vadd.f32 %v697_v13, %v674_v44  ;;  %v2675_v58 = vmov %v2671_v62  ;;  %v2676_v7 = vmov %v2672_v5  ;;  %v2691_v13 = vld [vmem:[#allocation70_spill] sm:$0xff] }
 0x136   : > { %v706_v51 = vadd.f32 %v704_v17, %v681_v0  ;;  %v696_v29 = vmul.f32 %v2675_v58, %v683_v23  ;;  %v703_v18 = vmul.f32 %v2676_v7, %v683_v23  ;;  %v2677_v19 = vstv %s1842_s13  ;;  %v2690_v0 = vld [vmem:[#allocation68_spill] sm:$0xff]  ;;  %v2692_v17 = vld [vmem:[#allocation71_spill] sm:$0xff]  ;;  %v783_v58 = vpop.permute.xlu1 %782 }
 0x137   : > { %v691_v54 = vadd.f32 %v689_v16, %v666_v59  ;;  %v715_v38 = vmul.f32 %v2677_v19, %v710_v9  ;;  %v2678_v20 = vstv %s1863_s9  ;;  %v2679_v4 = vstv %s1872_s29  ;;  %s2704_s29 = sld [smem:[#allocation17_spill]] }
 0x138   : > { %v722_v15 = vmul.f32 %v2678_v20, %v710_v9  ;;  %v729_v2 = vmul.f32 %v2679_v4, %v710_v9  ;;  %v698_v56 = vadd.f32 %v696_v29, %v673_v11  ;;  %v705_v10 = vadd.f32 %v703_v18, %v680_v3  ;;  %v781_v29 = vpop.permute.xlu0 %780 }
 0x139   : > { %v2680_v49 = vmov %v2677_v19  ;;  %v2681_v8 = vmov %v2678_v20  ;;  %v717_v26 = vadd.f32 %v715_v38, %v692_v28  ;;  %v2682_v41 = vmov %v2679_v4  ;;  %s206_s13 = sand.u32 1, %s2685_s22  }
 0x13a   : > { %v714_v32 = vmul.f32 %v2680_v49, %v708_v21  ;;  %v721_v33 = vmul.f32 %v2681_v8, %v708_v21  ;;  %v724_v25 = vadd.f32 %v722_v15, %v699_v22  ;;  %v731_v46 = vadd.f32 %v729_v2, %v706_v51  ;;  %s2304_s9 = smul.u32 48, %s206_s13  ;;  %s2336_s3 = scalar_lea.sflag [#allocation4], %s206_s13 }
 0x13b   : > { %v728_v6 = vmul.f32 %v2682_v41, %v708_v21  ;;  %v848_v35 = vstv %s2223_s11  ;;  %v859_v39 = vstv %s2230_s21  ;;  %v740_v50 = vadd.f32 %v2683_v36, %v717_v26 }
 0x13c   : > { %v716_v40 = vadd.f32 %v714_v32, %v691_v54  ;;  %v723_v24 = vadd.f32 %v721_v33, %v698_v56  ;;  %v747_v52 = vadd.f32 %v2684_v48, %v724_v25  ;;  %v754_v31 = vadd.f32 %v2686_v61, %v731_v46  ;;  %s208_s14 = scalar_lea.vmem [#allocation9], %s2304_s9 }
 0x13d   : > { %v730_v57 = vadd.f32 %v728_v6, %v705_v10  ;;  %v2687_v23 = vstv %s1904_s23  ;;  %v2688_v43 = vstv %s1925_s5  ;;  %v2689_v63 = vstv %s1943_s17  ;;  %s1020_s23 = smul.u32 768, %s2704_s29  ;;  %s903_s15 = sshll.u32 %s208_s14, 4  ;;  %s2332_s15 = int_to_ptr.vmem [resolvable:$true] %s903_s15 }
 0x13e   : > { %v763_v60 = vmul.f32 %v2687_v23, %v758_v30  ;;  %v770_v44 = vmul.f32 %v2688_v43, %v758_v30  ;;  %v777_v12 = vmul.f32 %v2689_v63, %v758_v30  ;;  %v739_v62 = vadd.f32 %v2690_v0, %v716_v40  ;;  %v831_v40 = vpop.permute.xlu1 %830  ;;  %s2706_s5 = sld [smem:[#allocation21_spill]]  ;;  %s1168_s27 = scalar_lea.vmem %s2332_s15, 768 }
 0x13f   : > { %v746_v5 = vadd.f32 %v2691_v13, %v723_v24  ;;  %v753_v59 = vadd.f32 %v2692_v17, %v730_v57  ;;  %v2694_v28 = vmov %v2687_v23  ;;  %v2695_v1 = vmov %v2688_v43  ;;  %v829_v24 = vpop.permute.xlu0 %828  ;;  %p1169_p4 = scmp.ne.s32.totalorder %s2332_s15, %s1168_s27  ;;  %p1175_p13 = scmp.lt.s32.totalorder %s2332_s15, %s1173_s4 }
 0x140   : > { %v762_v11 = vmul.f32 %v2694_v28, %v756_v37  ;;  %v769_v3 = vmul.f32 %v2695_v1, %v756_v37  ;;  %v765_v45 = vadd.f32 %v763_v60, %v740_v50  ;;  %v772_v16 = vadd.f32 %v770_v44, %v747_v52  ;;  %p1176_p1 = scmp.lt.s32.totalorder %s1174_s2, %s1168_s27 }
 0x141   : > { %v2696_v22 = vmov %v2689_v63  ;;  %v866_v7 = vstv %s2251_s18  ;;  %v779_v18 = vadd.f32 %v777_v12, %v754_v31  ;;  %v2697_v21 = vstv %s1945_s28 }
 0x142   : > { %v776_v51 = vmul.f32 %v2696_v22, %v756_v37  ;;  %v764_v9 = vadd.f32 %v762_v11, %v739_v62  ;;  %v788_v54 = vmul.f32 %v2697_v21, %v783_v58  ;;  %v2698_v19 = vstv %s1963_s20  ;;  %v856_v62 = vpop.permute.xlu1 %855  ;;  %s2707_s20 = sld [smem:[#allocation75_spill]]  ;;  %p1177_p6 = por %p1176_p1, %p1175_p13 }
 0x143   : > { %v795_v38 = vmul.f32 %v2698_v19, %v783_v58  ;;  %v771_v20 = vadd.f32 %v769_v3, %v746_v5  ;;  %v2699_v15 = vstv %s2693_s1  ;;  %v2700_v2 = vmov %v2697_v21  ;;  %v854_v13 = vpop.permute.xlu0 %853 }
 0x144   : > { %v802_v4 = vmul.f32 %v2699_v15, %v783_v58  ;;  %v787_v56 = vmul.f32 %v2700_v2, %v781_v29  ;;  %v2701_v10 = vmov %v2698_v19  ;;  %v778_v32 = vadd.f32 %v776_v51, %v753_v59  ;;  %p2708_p8 = scmp.ne.s32.totalorder %s2706_s5, 0 }
 0x145   : > { %v794_v49 = vmul.f32 %v2701_v10, %v781_v29  ;;  %v790_v8 = vadd.f32 %v788_v54, %v765_v45  ;;  %v797_v33 = vadd.f32 %v795_v38, %v772_v16  ;;  %v2702_v26 = vmov %v2699_v15 }
 0x146   : > { %v801_v25 = vmul.f32 %v2702_v26, %v781_v29  ;;  %v804_v46 = vadd.f32 %v802_v4, %v779_v18  ;;  %v789_v41 = vadd.f32 %v787_v56, %v764_v9  ;;  %v873_v30 = vstv %s2268_s19  ;;  %p1170_p10 = pnand %p1169_p4, %p2708_p8 }
 0x147   : > { %v796_v6 = vadd.f32 %v794_v49, %v771_v20  ;;  %v813_v57 = vadd.f32 %v2023_v55, %v790_v8  ;;  %v820_v36 = vadd.f32 %v2097_v14, %v797_v33  ;;  %v2703_v50 = vstv %s1999_s8 }
 0x148   : > { %v803_v37 = vadd.f32 %v801_v25, %v778_v32  ;;  %v836_v48 = vmul.f32 %v2703_v50, %v831_v40  ;;  %v827_v52 = vadd.f32 %v2183_v42, %v804_v46  ;;  %v843_v61 = vmul.f32 %v841_v53, %v831_v40  ;;  %s2330_s8 = scalar_lea.hbm %s2707_s20, %s1020_s23  ;;  %p1171_p11 = pneg %p1170_p10 }
 0x149   : > { %v850_v31 = vmul.f32 %v848_v35, %v831_v40  ;;  %v812_v23 = vadd.f32 %v2048_v34, %v789_v41  ;;  %v819_v43 = vadd.f32 %v2188_v47, %v796_v6  ;;  %v2705_v55 = vmov %v2703_v50 }
 0x14a   : > { %v838_v60 = vadd.f32 %v836_v48, %v813_v57  ;;  %v826_v44 = vadd.f32 %v2228_v27, %v803_v37  ;;  %v835_v63 = vmul.f32 %v2705_v55, %v829_v24  ;;  %v845_v14 = vadd.f32 %v843_v61, %v820_v36  ;;  %p1178_p7 = pnand %p1177_p6, %p1171_p11 }
 0x14b   : > { %v852_v12 = vadd.f32 %v850_v31, %v827_v52  ;;  %v842_v0 = vmul.f32 %v841_v53, %v829_v24  ;;  %v849_v42 = vmul.f32 %v848_v35, %v829_v24  ;;  %v861_v34 = vmul.f32 %v859_v39, %v856_v62 }
 0x14c   : > { %v837_v5 = vadd.f32 %v835_v63, %v812_v23  ;;  %v868_v17 = vmul.f32 %v866_v7, %v856_v62  ;;  %v875_v59 = vmul.f32 %v873_v30, %v856_v62  ;;  %v860_v27 = vmul.f32 %v859_v39, %v854_v13 }
 0x14d   : > { %v844_v47 = vadd.f32 %v842_v0, %v819_v43  ;;  %v851_v28 = vadd.f32 %v849_v42, %v826_v44  ;;  %v867_v11 = vmul.f32 %v866_v7, %v854_v13  ;;  %v863_v1 = vadd.f32 %v861_v34, %v838_v60 }
 0x14e   : > { %v870_v3 = vadd.f32 %v868_v17, %v845_v14  ;;  %v877_v53 = vadd.f32 %v875_v59, %v852_v12  ;;  %v874_v35 = vmul.f32 %v873_v30, %v854_v13  ;;  %v862_v45 = vadd.f32 %v860_v27, %v837_v5 }
 0x14f   : > { %v869_v16 = vadd.f32 %v867_v11, %v844_v47  ;;  %879 = vst [vmem:[%s208_s14 + $0x8] sm:$0x3f] %v863_v1 }
 0x150   : > { %1011 = vst [vmem:[%s208_s14 + $0x18] sm:$0x3f] %v870_v3  ;;  %1013 = vst [vmem:[%s208_s14 + $0x28] sm:$0x3f] %v877_v53  ;;  %v876_v39 = vadd.f32 %v874_v35, %v851_v28 }
 0x151   : > { %878 = vst [vmem:[%s208_s14] sm:$0xff] %v862_v45  ;;  %1010 = vst [vmem:[%s208_s14 + $0x10] sm:$0xff] %v869_v16 }
 0x152   : > { %1012 = vst [vmem:[%s208_s14 + $0x20] sm:$0xff] %v876_v39 }
 0x153   : > { %1181 = shalt.err (!%p1178_p7)
}
 0x154   : > { %s1182_s10 = scalar_lea.hbm %s2330_s8, 768  ;;  %s1186_s24 = scalar_lea.hbm %s2707_s20, 1536 }
 0x155   : > { %p1183_p9 = scmp.ne.s32.totalorder %s2330_s8, %s1182_s10  ;;  %p1187_p2 = scmp.lt.u32.totalorder %s2330_s8, %s2707_s20 }
 0x156   : > { %p1188_p3 = scmp.lt.u32.totalorder %s1186_s24, %s1182_s10  ;;  %p1190_p4 = scmp.lt.u32.totalorder %s1182_s10, %s2330_s8 }
 0x157   : > { %p1184_p12 = pnand %p1183_p9, %p2708_p8 }
 0x158   : > { %p1189_p5 = por %p1188_p3, %p1187_p2 }
 0x159   : > { %p1185_p0 = pneg %p1184_p12 }
 0x15a   : > { %p1191_p10 = por %p1190_p4, %p1189_p5 }
 0x15c   : > { %p1192_p11 = pnand %p1191_p10, %p1185_p0 }
 0x15e   : > { %1195 = shalt.err (!%p1192_p11)
}
 0x15f   : > { %s1268_s12 = smov 128   ;;  %s1269_s11 = smov 8  }
 0x160   : > { %1034 = dma.vmem_to_hbm [thread:$0]  (%p2708_p8), %s2332_s15, 768, %s2330_s8, %s2336_s3, %s1268_s12, %s1268_s12, %s1269_s11  }
 0x161 PF: > { %s2709_s21 = sld [smem:[#allocation19_spill]]  ;;  %s2710_s30 = sld [smem:[#allocation14_spill]] }
 0x162   : > { %s2711_s18 = sld [smem:[#allocation22_spill]] }
 0x167   : > { %p1056_p13 = scmp.ge.s32.totalorder %s2709_s21, 2  ;;  %s918_s6 = sand.u32 1, %s2710_s30  }
 0x168   : > { %p2712_p1 = scmp.ne.s32.totalorder %s2711_s18, 0  ;;  %s919_s19 = scalar_lea.sflag [#allocation4], %s918_s6 }
 0x16a   : > { %p1047_p6 = pnand %p1056_p13, %p2712_p1 }
 0x16c   : > { %1233 = dma.done.wait (!%p1047_p6), %s919_s19, 768  }
 0x16d   : > { %1235 = vsyncadd (!%p1047_p6), %s919_s19, 4294966528  ;;  %s19_s17 = sadd.s32 1, %s2709_s21   ;;  %s2713_s12 = sld [smem:[#allocation15_spill]] }
 0x16e   : > { %p16_p7 = scmp.ge.s32.totalorder %s19_s17, 4   ;;  %s2714_s13 = sld [smem:[#allocation16_spill]] }
 0x16f   : > { %s2715_s14 = sld [smem:[#allocation23_spill]]  ;;  %s2716_s15 = sld [smem:[#allocation18_spill]] }
 0x170   : > { %s2717_s16 = sld [smem:[#allocation20_spill]]  ;;  %18 = sbr.rel (!%p16_p7) target bundleno = 12 (0xc), region = 83 }
 0x177   :  { %924 = vsyncpa [#allocation3], 1 }
 0x178   :  { %926 = vsyncpa [#allocation3 + $0x1], 1 }
 0x179   :  { %927 = vsyncpa [#allocation4], 1 }
 0x17a   :  { %929 = vsyncpa [#allocation4 + $0x1], 1 }
 0x17b   :  { %930 = vsyncpa [#allocation5], 1 }
 0x17c   :  { %932 = vsyncpa [#allocation5 + $0x1], 1 }
 0x17d   :  { %933 = vsyncpa [#allocation7], 1 }

</bundles_post_ra>
